<compile_context>
chip_gen: v6e
topology: v6e:2x2x1
jax: 0.10.0
libtpu: 0.0.40
codegen_flags: <defaults>
</compile_context>

<pallas_src>
import jax
import jax.numpy as jnp
from jax.experimental import pallas as pl
from jax.experimental.pallas import tpu as pltpu


# ----------------------- hyperparameters (small, deterministic) -----------------------
N_LAYERS = 2
HIDDEN_DIM = 32
N_VOCAB = 100
EMBED_DIM = 32          # == HIDDEN_DIM so the per-layer weights stack into one tensor
N_CLASSES = 2
BATCH = 2
SEQ_LEN = 8
BATCH_PAD = 8           # pad batch to one full sublane tile inside the kernel

assert EMBED_DIM == HIDDEN_DIM, "weight packing below assumes E == H"


def make_rnn_kernel(n_layers: int, seq_len: int, batch: int, batch_pad: int):
    """Kernel refs (in order):
       tok_ref  [B, T]        int32 token ids (SMEM)
       emb_ref  [V, 1, E]     embedding table (VMEM; leading dim dynamically indexed)
       w_ref    [L, 2, H, H]  w_ref[l,0] = W_ih^T, w_ref[l,1] = W_hh^T
       b_ref    [L, 1, H]     b_ih + b_hh per layer
       wout_ref [H, C], bout_ref [1, C]
       out_ref  [B, C]
       x_ref    [T*BP, E]     VMEM scratch: gathered, batch-padded, time-major input
    """
    def kernel(tok_ref, emb_ref, w_ref, b_ref, wout_ref, bout_ref, out_ref, x_ref):
        T, B, BP = seq_len, batch, batch_pad
        H = w_ref.shape[-1]

        # ---- in-kernel embedding gather (off the recurrence critical path) ----
        x_ref[...] = jnp.zeros_like(x_ref)          # keep padded rows deterministic
        for t in range(T):
            for b in range(B):
                tok = tok_ref[b, t]                              # SMEM scalar read
                x_ref[pl.ds(t * BP + b, 1), :] = emb_ref[tok]    # [1, E] row load/store

        # Tiny packed weights loaded once; static int indexing below is free.
        w_all = w_ref[...]          # [L, 2, H, H]
        b_all = b_ref[...]          # [L, 1, H]

        # ---- layer-0 input projection for ALL timesteps: one MXU matmul ----
        xproj0 = (jnp.dot(x_ref[...], w_all[0, 0],
                          preferred_element_type=jnp.float32) + b_all[0])   # [T*BP, H]

        # ---- wavefront recurrence (fully unrolled; deps are (l-1,t) and (l,t-1)) ----
        h = [jnp.zeros((BP, H), jnp.float32) for _ in range(n_layers)]
        for t in range(T):
            for l in range(n_layers):
                if l == 0:
                    # (8,128)-aligned full-tile slice: no sublane shuffle on the chain.
                    inp = xproj0[t * BP:(t + 1) * BP, :]
                else:
                    inp = (jnp.dot(h[l - 1], w_all[l, 0],
                                   preferred_element_type=jnp.float32) + b_all[l])
                h[l] = jnp.tanh(inp + jnp.dot(h[l], w_all[l, 1],
                                              preferred_element_type=jnp.float32))

        # ---- output head on last timestep of the top layer (real rows only) ----
        logits = (jnp.dot(h[-1], wout_ref[...], preferred_element_type=jnp.float32)
                  + bout_ref[...])                                # [BP, C]
        out_ref[...] = jax.nn.sigmoid(logits[:B, :]).astype(out_ref.dtype)

    return kernel


@jax.jit
def basic_rnn_forward(tokens, packed):
    """tokens: int32 [B, T].  packed: dict from pack_params (static, pre-packed)."""
    B, T = tokens.shape
    vmem = pl.BlockSpec(memory_space=pltpu.MemorySpace.VMEM)
    smem = pl.BlockSpec(memory_space=pltpu.MemorySpace.SMEM)
    return pl.pallas_call(
        make_rnn_kernel(N_LAYERS, T, B, BATCH_PAD),
        out_shape=jax.ShapeDtypeStruct((B, N_CLASSES), jnp.float32),
        in_specs=[smem, vmem, vmem, vmem, vmem, vmem],
        out_specs=vmem,
        scratch_shapes=[pltpu.VMEM((T * BATCH_PAD, EMBED_DIM), jnp.float32)],
    )(tokens, packed["embed3d"], packed["w_rnn"], packed["b_rnn"],
      packed["w_out"], packed["b_out"])


def init_params(key):
    """Deterministic synthetic parameters, shapes matching nn.Embedding / nn.RNN / nn.Linear."""
    keys = jax.random.split(key, 4 + 4 * N_LAYERS)
    k_iter = iter(keys)
    scale = 0.1
    params = {}
    # nn.Embedding(n_vocab, embed_dim): weight [n_vocab, E]
    params["embed"] = scale * jax.random.normal(next(k_iter), (N_VOCAB, EMBED_DIM), jnp.float32)
    for l in range(N_LAYERS):
        in_dim = EMBED_DIM if l == 0 else HIDDEN_DIM
        # PyTorch stores weight_ih_l{l} as [H, in_dim]; pre-transpose to [in_dim, H].
        w_ih = scale * jax.random.normal(next(k_iter), (HIDDEN_DIM, in_dim), jnp.float32)
        w_hh = scale * jax.random.normal(next(k_iter), (HIDDEN_DIM, HIDDEN_DIM), jnp.float32)
        b_ih = scale * jax.random.normal(next(k_iter), (HIDDEN_DIM,), jnp.float32)
        b_hh = scale * jax.random.normal(next(k_iter), (HIDDEN_DIM,), jnp.float32)
        params[f"w_ih_{l}"] = w_ih.T
        params[f"w_hh_{l}"] = w_hh.T
        params[f"b_{l}"] = (b_ih + b_hh).reshape(1, HIDDEN_DIM)
    # nn.Linear(hidden, n_classes): weight [C, H], bias [C]
    w_out = scale * jax.random.normal(next(k_iter), (N_CLASSES, HIDDEN_DIM), jnp.float32)
    b_out = scale * jax.random.normal(next(k_iter), (N_CLASSES,), jnp.float32)
    params["w_out"] = w_out.T
    params["b_out"] = b_out.reshape(1, N_CLASSES)
    return params


def pack_params(params):
    """One-time packing of static weights into kernel-friendly tensors (not per-call)."""
    packed = {
        "embed3d": params["embed"].reshape(N_VOCAB, 1, EMBED_DIM),
        "w_rnn": jnp.stack(
            [jnp.stack([params[f"w_ih_{l}"], params[f"w_hh_{l}"]], axis=0)
             for l in range(N_LAYERS)], axis=0),                                  # [L,2,H,H]
        "b_rnn": jnp.stack([params[f"b_{l}"] for l in range(N_LAYERS)], axis=0),  # [L,1,H]
        "w_out": params["w_out"],
        "b_out": params["b_out"],
    }
    return jax.tree_util.tree_map(jnp.asarray, packed)


def reference_forward(tokens, params):
    """Pure-JAX reference of the same forward (for sanity checking)."""
    emb = jnp.take(params["embed"], tokens, axis=0)          # [B, T, E]
    B = tokens.shape[0]
    hs = [jnp.zeros((B, HIDDEN_DIM), jnp.float32) for _ in range(N_LAYERS)]
    for t in range(tokens.shape[1]):
        inp = emb[:, t, :]
        for l in range(N_LAYERS):
            hs[l] = jnp.tanh(inp @ params[f"w_ih_{l}"] + hs[l] @ params[f"w_hh_{l}"]
                             + params[f"b_{l}"])
            inp = hs[l]
    logits = hs[-1] @ params["w_out"] + params["b_out"]
    return jax.nn.sigmoid(logits)


if __name__ == "__main__":
    key = jax.random.PRNGKey(0)
    k_tok, k_par = jax.random.split(key)
    tokens = jax.random.randint(k_tok, (BATCH, SEQ_LEN), 0, N_VOCAB, dtype=jnp.int32)
    params = init_params(k_par)
    packed = pack_params(params)

    out = basic_rnn_forward(tokens, packed)
    out = jax.block_until_ready(out)

    ref = reference_forward(tokens, params)
    assert out.shape == (BATCH, N_CLASSES)
    assert jnp.allclose(out, ref, atol=1e-5, rtol=1e-5), (out, ref)

    print("KERNEL_OK")
</pallas_src>

<mosaic_0001>
module attributes {stable_mosaic.version = 11 : i64} {
  func.func @kernel(%arg0: memref<2x8xi32, #tpu.memory_space<smem>>, %arg1: memref<100x1x32xf32, #tpu.memory_space<vmem>>, %arg2: memref<2x2x32x32xf32, #tpu.memory_space<vmem>>, %arg3: memref<2x1x32xf32, #tpu.memory_space<vmem>>, %arg4: memref<32x2xf32, #tpu.memory_space<vmem>>, %arg5: memref<1x2xf32, #tpu.memory_space<vmem>>, %arg6: memref<2x2xf32, #tpu.memory_space<vmem>>, %arg7: memref<64x32xf32, #tpu.memory_space<vmem>>) attributes {dimension_semantics = [], scalar_prefetch = 0 : i64, scratch_operands = 1 : i64, tpu.core_type = #tpu.core_type<tc>} {
    %cst = arith.constant 0.000000e+00 : f32
    %0 = vector.broadcast %cst : f32 to vector<64x32xf32>
    %c0 = arith.constant 0 : index
    %c0_0 = arith.constant 0 : index
    %1 = vector.load %arg7[%c0, %c0_0] : memref<64x32xf32, #tpu.memory_space<vmem>>, vector<64x32xf32>
    tpu.vector_store %arg7[%c0, %c0_0], %0 {strides = array<i32>} : memref<64x32xf32, #tpu.memory_space<vmem>>, vector<64x32xf32>,
    %c0_1 = arith.constant 0 : index
    %c0_2 = arith.constant 0 : index
    %2 = memref.load %arg0[%c0_1, %c0_2] : memref<2x8xi32, #tpu.memory_space<smem>>
    %3 = arith.index_cast %2 : i32 to index
    %c0_3 = arith.constant 0 : index
    %c0_4 = arith.constant 0 : index
    %4 = vector.load %arg1[%3, %c0_3, %c0_4] : memref<100x1x32xf32, #tpu.memory_space<vmem>>, vector<1x1x32xf32>
    %5 = vector.shape_cast %4 : vector<1x1x32xf32> to vector<1x32xf32>
    %c0_5 = arith.constant 0 : index
    %c0_6 = arith.constant 0 : index
    %6 = vector.load %arg7[%c0_5, %c0_6] : memref<64x32xf32, #tpu.memory_space<vmem>>, vector<1x32xf32>
    tpu.vector_store %arg7[%c0_5, %c0_6], %5 {strides = array<i32>} : memref<64x32xf32, #tpu.memory_space<vmem>>, vector<1x32xf32>,
    %c1 = arith.constant 1 : index
    %c0_7 = arith.constant 0 : index
    %7 = memref.load %arg0[%c1, %c0_7] : memref<2x8xi32, #tpu.memory_space<smem>>
    %8 = arith.index_cast %7 : i32 to index
    %c0_8 = arith.constant 0 : index
    %c0_9 = arith.constant 0 : index
    %9 = vector.load %arg1[%8, %c0_8, %c0_9] : memref<100x1x32xf32, #tpu.memory_space<vmem>>, vector<1x1x32xf32>
    %10 = vector.shape_cast %9 : vector<1x1x32xf32> to vector<1x32xf32>
    %c1_10 = arith.constant 1 : index
    %c0_11 = arith.constant 0 : index
    %11 = vector.load %arg7[%c1_10, %c0_11] : memref<64x32xf32, #tpu.memory_space<vmem>>, vector<1x32xf32>
    tpu.vector_store %arg7[%c1_10, %c0_11], %10 {strides = array<i32>} : memref<64x32xf32, #tpu.memory_space<vmem>>, vector<1x32xf32>,
    %c0_12 = arith.constant 0 : index
    %c1_13 = arith.constant 1 : index
    %12 = memref.load %arg0[%c0_12, %c1_13] : memref<2x8xi32, #tpu.memory_space<smem>>
    %13 = arith.index_cast %12 : i32 to index
    %c0_14 = arith.constant 0 : index
    %c0_15 = arith.constant 0 : index
    %14 = vector.load %arg1[%13, %c0_14, %c0_15] : memref<100x1x32xf32, #tpu.memory_space<vmem>>, vector<1x1x32xf32>
    %15 = vector.shape_cast %14 : vector<1x1x32xf32> to vector<1x32xf32>
    %c8 = arith.constant 8 : index
    %c0_16 = arith.constant 0 : index
    %16 = vector.load %arg7[%c8, %c0_16] : memref<64x32xf32, #tpu.memory_space<vmem>>, vector<1x32xf32>
    tpu.vector_store %arg7[%c8, %c0_16], %15 {strides = array<i32>} : memref<64x32xf32, #tpu.memory_space<vmem>>, vector<1x32xf32>,
    %c1_17 = arith.constant 1 : index
    %c1_18 = arith.constant 1 : index
    %17 = memref.load %arg0[%c1_17, %c1_18] : memref<2x8xi32, #tpu.memory_space<smem>>
    %18 = arith.index_cast %17 : i32 to index
    %c0_19 = arith.constant 0 : index
    %c0_20 = arith.constant 0 : index
    %19 = vector.load %arg1[%18, %c0_19, %c0_20] : memref<100x1x32xf32, #tpu.memory_space<vmem>>, vector<1x1x32xf32>
    %20 = vector.shape_cast %19 : vector<1x1x32xf32> to vector<1x32xf32>
    %c9 = arith.constant 9 : index
    %c0_21 = arith.constant 0 : index
    %21 = vector.load %arg7[%c9, %c0_21] : memref<64x32xf32, #tpu.memory_space<vmem>>, vector<1x32xf32>
    tpu.vector_store %arg7[%c9, %c0_21], %20 {strides = array<i32>} : memref<64x32xf32, #tpu.memory_space<vmem>>, vector<1x32xf32>,
    %c0_22 = arith.constant 0 : index
    %c2 = arith.constant 2 : index
    %22 = memref.load %arg0[%c0_22, %c2] : memref<2x8xi32, #tpu.memory_space<smem>>
    %23 = arith.index_cast %22 : i32 to index
    %c0_23 = arith.constant 0 : index
    %c0_24 = arith.constant 0 : index
    %24 = vector.load %arg1[%23, %c0_23, %c0_24] : memref<100x1x32xf32, #tpu.memory_space<vmem>>, vector<1x1x32xf32>
    %25 = vector.shape_cast %24 : vector<1x1x32xf32> to vector<1x32xf32>
    %c16 = arith.constant 16 : index
    %c0_25 = arith.constant 0 : index
    %26 = vector.load %arg7[%c16, %c0_25] : memref<64x32xf32, #tpu.memory_space<vmem>>, vector<1x32xf32>
    tpu.vector_store %arg7[%c16, %c0_25], %25 {strides = array<i32>} : memref<64x32xf32, #tpu.memory_space<vmem>>, vector<1x32xf32>,
    %c1_26 = arith.constant 1 : index
    %c2_27 = arith.constant 2 : index
    %27 = memref.load %arg0[%c1_26, %c2_27] : memref<2x8xi32, #tpu.memory_space<smem>>
    %28 = arith.index_cast %27 : i32 to index
    %c0_28 = arith.constant 0 : index
    %c0_29 = arith.constant 0 : index
    %29 = vector.load %arg1[%28, %c0_28, %c0_29] : memref<100x1x32xf32, #tpu.memory_space<vmem>>, vector<1x1x32xf32>
    %30 = vector.shape_cast %29 : vector<1x1x32xf32> to vector<1x32xf32>
    %c17 = arith.constant 17 : index
    %c0_30 = arith.constant 0 : index
    %31 = vector.load %arg7[%c17, %c0_30] : memref<64x32xf32, #tpu.memory_space<vmem>>, vector<1x32xf32>
    tpu.vector_store %arg7[%c17, %c0_30], %30 {strides = array<i32>} : memref<64x32xf32, #tpu.memory_space<vmem>>, vector<1x32xf32>,
    %c0_31 = arith.constant 0 : index
    %c3 = arith.constant 3 : index
    %32 = memref.load %arg0[%c0_31, %c3] : memref<2x8xi32, #tpu.memory_space<smem>>
    %33 = arith.index_cast %32 : i32 to index
    %c0_32 = arith.constant 0 : index
    %c0_33 = arith.constant 0 : index
    %34 = vector.load %arg1[%33, %c0_32, %c0_33] : memref<100x1x32xf32, #tpu.memory_space<vmem>>, vector<1x1x32xf32>
    %35 = vector.shape_cast %34 : vector<1x1x32xf32> to vector<1x32xf32>
    %c24 = arith.constant 24 : index
    %c0_34 = arith.constant 0 : index
    %36 = vector.load %arg7[%c24, %c0_34] : memref<64x32xf32, #tpu.memory_space<vmem>>, vector<1x32xf32>
    tpu.vector_store %arg7[%c24, %c0_34], %35 {strides = array<i32>} : memref<64x32xf32, #tpu.memory_space<vmem>>, vector<1x32xf32>,
    %c1_35 = arith.constant 1 : index
    %c3_36 = arith.constant 3 : index
    %37 = memref.load %arg0[%c1_35, %c3_36] : memref<2x8xi32, #tpu.memory_space<smem>>
    %38 = arith.index_cast %37 : i32 to index
    %c0_37 = arith.constant 0 : index
    %c0_38 = arith.constant 0 : index
    %39 = vector.load %arg1[%38, %c0_37, %c0_38] : memref<100x1x32xf32, #tpu.memory_space<vmem>>, vector<1x1x32xf32>
    %40 = vector.shape_cast %39 : vector<1x1x32xf32> to vector<1x32xf32>
    %c25 = arith.constant 25 : index
    %c0_39 = arith.constant 0 : index
    %41 = vector.load %arg7[%c25, %c0_39] : memref<64x32xf32, #tpu.memory_space<vmem>>, vector<1x32xf32>
    tpu.vector_store %arg7[%c25, %c0_39], %40 {strides = array<i32>} : memref<64x32xf32, #tpu.memory_space<vmem>>, vector<1x32xf32>,
    %c0_40 = arith.constant 0 : index
    %c4 = arith.constant 4 : index
    %42 = memref.load %arg0[%c0_40, %c4] : memref<2x8xi32, #tpu.memory_space<smem>>
    %43 = arith.index_cast %42 : i32 to index
    %c0_41 = arith.constant 0 : index
    %c0_42 = arith.constant 0 : index
    %44 = vector.load %arg1[%43, %c0_41, %c0_42] : memref<100x1x32xf32, #tpu.memory_space<vmem>>, vector<1x1x32xf32>
    %45 = vector.shape_cast %44 : vector<1x1x32xf32> to vector<1x32xf32>
    %c32 = arith.constant 32 : index
    %c0_43 = arith.constant 0 : index
    %46 = vector.load %arg7[%c32, %c0_43] : memref<64x32xf32, #tpu.memory_space<vmem>>, vector<1x32xf32>
    tpu.vector_store %arg7[%c32, %c0_43], %45 {strides = array<i32>} : memref<64x32xf32, #tpu.memory_space<vmem>>, vector<1x32xf32>,
    %c1_44 = arith.constant 1 : index
    %c4_45 = arith.constant 4 : index
    %47 = memref.load %arg0[%c1_44, %c4_45] : memref<2x8xi32, #tpu.memory_space<smem>>
    %48 = arith.index_cast %47 : i32 to index
    %c0_46 = arith.constant 0 : index
    %c0_47 = arith.constant 0 : index
    %49 = vector.load %arg1[%48, %c0_46, %c0_47] : memref<100x1x32xf32, #tpu.memory_space<vmem>>, vector<1x1x32xf32>
    %50 = vector.shape_cast %49 : vector<1x1x32xf32> to vector<1x32xf32>
    %c33 = arith.constant 33 : index
    %c0_48 = arith.constant 0 : index
    %51 = vector.load %arg7[%c33, %c0_48] : memref<64x32xf32, #tpu.memory_space<vmem>>, vector<1x32xf32>
    tpu.vector_store %arg7[%c33, %c0_48], %50 {strides = array<i32>} : memref<64x32xf32, #tpu.memory_space<vmem>>, vector<1x32xf32>,
    %c0_49 = arith.constant 0 : index
    %c5 = arith.constant 5 : index
    %52 = memref.load %arg0[%c0_49, %c5] : memref<2x8xi32, #tpu.memory_space<smem>>
    %53 = arith.index_cast %52 : i32 to index
    %c0_50 = arith.constant 0 : index
    %c0_51 = arith.constant 0 : index
    %54 = vector.load %arg1[%53, %c0_50, %c0_51] : memref<100x1x32xf32, #tpu.memory_space<vmem>>, vector<1x1x32xf32>
    %55 = vector.shape_cast %54 : vector<1x1x32xf32> to vector<1x32xf32>
    %c40 = arith.constant 40 : index
    %c0_52 = arith.constant 0 : index
    %56 = vector.load %arg7[%c40, %c0_52] : memref<64x32xf32, #tpu.memory_space<vmem>>, vector<1x32xf32>
    tpu.vector_store %arg7[%c40, %c0_52], %55 {strides = array<i32>} : memref<64x32xf32, #tpu.memory_space<vmem>>, vector<1x32xf32>,
    %c1_53 = arith.constant 1 : index
    %c5_54 = arith.constant 5 : index
    %57 = memref.load %arg0[%c1_53, %c5_54] : memref<2x8xi32, #tpu.memory_space<smem>>
    %58 = arith.index_cast %57 : i32 to index
    %c0_55 = arith.constant 0 : index
    %c0_56 = arith.constant 0 : index
    %59 = vector.load %arg1[%58, %c0_55, %c0_56] : memref<100x1x32xf32, #tpu.memory_space<vmem>>, vector<1x1x32xf32>
    %60 = vector.shape_cast %59 : vector<1x1x32xf32> to vector<1x32xf32>
    %c41 = arith.constant 41 : index
    %c0_57 = arith.constant 0 : index
    %61 = vector.load %arg7[%c41, %c0_57] : memref<64x32xf32, #tpu.memory_space<vmem>>, vector<1x32xf32>
    tpu.vector_store %arg7[%c41, %c0_57], %60 {strides = array<i32>} : memref<64x32xf32, #tpu.memory_space<vmem>>, vector<1x32xf32>,
    %c0_58 = arith.constant 0 : index
    %c6 = arith.constant 6 : index
    %62 = memref.load %arg0[%c0_58, %c6] : memref<2x8xi32, #tpu.memory_space<smem>>
    %63 = arith.index_cast %62 : i32 to index
    %c0_59 = arith.constant 0 : index
    %c0_60 = arith.constant 0 : index
    %64 = vector.load %arg1[%63, %c0_59, %c0_60] : memref<100x1x32xf32, #tpu.memory_space<vmem>>, vector<1x1x32xf32>
    %65 = vector.shape_cast %64 : vector<1x1x32xf32> to vector<1x32xf32>
    %c48 = arith.constant 48 : index
    %c0_61 = arith.constant 0 : index
    %66 = vector.load %arg7[%c48, %c0_61] : memref<64x32xf32, #tpu.memory_space<vmem>>, vector<1x32xf32>
    tpu.vector_store %arg7[%c48, %c0_61], %65 {strides = array<i32>} : memref<64x32xf32, #tpu.memory_space<vmem>>, vector<1x32xf32>,
    %c1_62 = arith.constant 1 : index
    %c6_63 = arith.constant 6 : index
    %67 = memref.load %arg0[%c1_62, %c6_63] : memref<2x8xi32, #tpu.memory_space<smem>>
    %68 = arith.index_cast %67 : i32 to index
    %c0_64 = arith.constant 0 : index
    %c0_65 = arith.constant 0 : index
    %69 = vector.load %arg1[%68, %c0_64, %c0_65] : memref<100x1x32xf32, #tpu.memory_space<vmem>>, vector<1x1x32xf32>
    %70 = vector.shape_cast %69 : vector<1x1x32xf32> to vector<1x32xf32>
    %c49 = arith.constant 49 : index
    %c0_66 = arith.constant 0 : index
    %71 = vector.load %arg7[%c49, %c0_66] : memref<64x32xf32, #tpu.memory_space<vmem>>, vector<1x32xf32>
    tpu.vector_store %arg7[%c49, %c0_66], %70 {strides = array<i32>} : memref<64x32xf32, #tpu.memory_space<vmem>>, vector<1x32xf32>,
    %c0_67 = arith.constant 0 : index
    %c7 = arith.constant 7 : index
    %72 = memref.load %arg0[%c0_67, %c7] : memref<2x8xi32, #tpu.memory_space<smem>>
    %73 = arith.index_cast %72 : i32 to index
    %c0_68 = arith.constant 0 : index
    %c0_69 = arith.constant 0 : index
    %74 = vector.load %arg1[%73, %c0_68, %c0_69] : memref<100x1x32xf32, #tpu.memory_space<vmem>>, vector<1x1x32xf32>
    %75 = vector.shape_cast %74 : vector<1x1x32xf32> to vector<1x32xf32>
    %c56 = arith.constant 56 : index
    %c0_70 = arith.constant 0 : index
    %76 = vector.load %arg7[%c56, %c0_70] : memref<64x32xf32, #tpu.memory_space<vmem>>, vector<1x32xf32>
    tpu.vector_store %arg7[%c56, %c0_70], %75 {strides = array<i32>} : memref<64x32xf32, #tpu.memory_space<vmem>>, vector<1x32xf32>,
    %c1_71 = arith.constant 1 : index
    %c7_72 = arith.constant 7 : index
    %77 = memref.load %arg0[%c1_71, %c7_72] : memref<2x8xi32, #tpu.memory_space<smem>>
    %78 = arith.index_cast %77 : i32 to index
    %c0_73 = arith.constant 0 : index
    %c0_74 = arith.constant 0 : index
    %79 = vector.load %arg1[%78, %c0_73, %c0_74] : memref<100x1x32xf32, #tpu.memory_space<vmem>>, vector<1x1x32xf32>
    %80 = vector.shape_cast %79 : vector<1x1x32xf32> to vector<1x32xf32>
    %c57 = arith.constant 57 : index
    %c0_75 = arith.constant 0 : index
    %81 = vector.load %arg7[%c57, %c0_75] : memref<64x32xf32, #tpu.memory_space<vmem>>, vector<1x32xf32>
    tpu.vector_store %arg7[%c57, %c0_75], %80 {strides = array<i32>} : memref<64x32xf32, #tpu.memory_space<vmem>>, vector<1x32xf32>,
    %c0_76 = arith.constant 0 : index
    %c0_77 = arith.constant 0 : index
    %c0_78 = arith.constant 0 : index
    %c0_79 = arith.constant 0 : index
    %82 = vector.load %arg2[%c0_76, %c0_77, %c0_78, %c0_79] : memref<2x2x32x32xf32, #tpu.memory_space<vmem>>, vector<2x2x32x32xf32>
    %c0_80 = arith.constant 0 : index
    %c0_81 = arith.constant 0 : index
    %c0_82 = arith.constant 0 : index
    %83 = vector.load %arg3[%c0_80, %c0_81, %c0_82] : memref<2x1x32xf32, #tpu.memory_space<vmem>>, vector<2x1x32xf32>
    %c0_83 = arith.constant 0 : index
    %c0_84 = arith.constant 0 : index
    %84 = vector.load %arg7[%c0_83, %c0_84] : memref<64x32xf32, #tpu.memory_space<vmem>>, vector<64x32xf32>
    %85 = vector.extract_strided_slice %82 {offsets = [0, 0, 0, 0], sizes = [1, 1, 32, 32], strides = [1, 1, 1, 1]} : vector<2x2x32x32xf32> to vector<1x1x32x32xf32>
    %86 = vector.shape_cast %85 : vector<1x1x32x32xf32> to vector<32x32xf32>
    %cst_85 = arith.constant dense<0.000000e+00> : vector<64x32xf32>
    %87 = tpu.matmul %84, %86, %cst_85 {dimension_numbers = #tpu.dot_dimension_numbers<[1], [0], [0], [1], [0, 0, 1, 1], [], []>} : vector<64x32xf32>, vector<32x32xf32>, vector<64x32xf32> -> vector<64x32xf32>
    %88 = vector.extract_strided_slice %83 {offsets = [0, 0, 0], sizes = [1, 1, 32], strides = [1, 1, 1]} : vector<2x1x32xf32> to vector<1x1x32xf32>
    %89 = vector.shape_cast %88 : vector<1x1x32xf32> to vector<1x32xf32>
    %90 = vector.broadcast %89 : vector<1x32xf32> to vector<64x32xf32>
    %91 = arith.addf %87, %90 : vector<64x32xf32>
    %cst_86 = arith.constant 0.000000e+00 : f32
    %92 = vector.broadcast %cst_86 : f32 to vector<8x32xf32>
    %cst_87 = arith.constant 0.000000e+00 : f32
    %93 = vector.broadcast %cst_87 : f32 to vector<8x32xf32>
    %94 = vector.extract_strided_slice %91 {offsets = [0, 0], sizes = [8, 32], strides = [1, 1]} : vector<64x32xf32> to vector<8x32xf32>
    %95 = vector.extract_strided_slice %82 {offsets = [0, 1, 0, 0], sizes = [1, 1, 32, 32], strides = [1, 1, 1, 1]} : vector<2x2x32x32xf32> to vector<1x1x32x32xf32>
    %96 = vector.shape_cast %95 : vector<1x1x32x32xf32> to vector<32x32xf32>
    %cst_88 = arith.constant dense<0.000000e+00> : vector<8x32xf32>
    %97 = tpu.matmul %92, %96, %cst_88 {dimension_numbers = #tpu.dot_dimension_numbers<[1], [0], [0], [1], [0, 0, 1, 1], [], []>} : vector<8x32xf32>, vector<32x32xf32>, vector<8x32xf32> -> vector<8x32xf32>
    %98 = arith.addf %94, %97 : vector<8x32xf32>
    %99 = math.tanh %98 : vector<8x32xf32>
    %100 = vector.extract_strided_slice %82 {offsets = [1, 0, 0, 0], sizes = [1, 1, 32, 32], strides = [1, 1, 1, 1]} : vector<2x2x32x32xf32> to vector<1x1x32x32xf32>
    %101 = vector.shape_cast %100 : vector<1x1x32x32xf32> to vector<32x32xf32>
    %cst_89 = arith.constant dense<0.000000e+00> : vector<8x32xf32>
    %102 = tpu.matmul %99, %101, %cst_89 {dimension_numbers = #tpu.dot_dimension_numbers<[1], [0], [0], [1], [0, 0, 1, 1], [], []>} : vector<8x32xf32>, vector<32x32xf32>, vector<8x32xf32> -> vector<8x32xf32>
    %103 = vector.extract_strided_slice %83 {offsets = [1, 0, 0], sizes = [1, 1, 32], strides = [1, 1, 1]} : vector<2x1x32xf32> to vector<1x1x32xf32>
    %104 = vector.shape_cast %103 : vector<1x1x32xf32> to vector<1x32xf32>
    %105 = vector.broadcast %104 : vector<1x32xf32> to vector<8x32xf32>
    %106 = arith.addf %102, %105 : vector<8x32xf32>
    %107 = vector.extract_strided_slice %82 {offsets = [1, 1, 0, 0], sizes = [1, 1, 32, 32], strides = [1, 1, 1, 1]} : vector<2x2x32x32xf32> to vector<1x1x32x32xf32>
    %108 = vector.shape_cast %107 : vector<1x1x32x32xf32> to vector<32x32xf32>
    %cst_90 = arith.constant dense<0.000000e+00> : vector<8x32xf32>
    %109 = tpu.matmul %93, %108, %cst_90 {dimension_numbers = #tpu.dot_dimension_numbers<[1], [0], [0], [1], [0, 0, 1, 1], [], []>} : vector<8x32xf32>, vector<32x32xf32>, vector<8x32xf32> -> vector<8x32xf32>
    %110 = arith.addf %106, %109 : vector<8x32xf32>
    %111 = math.tanh %110 : vector<8x32xf32>
    %112 = vector.extract_strided_slice %91 {offsets = [8, 0], sizes = [8, 32], strides = [1, 1]} : vector<64x32xf32> to vector<8x32xf32>
    %113 = vector.extract_strided_slice %82 {offsets = [0, 1, 0, 0], sizes = [1, 1, 32, 32], strides = [1, 1, 1, 1]} : vector<2x2x32x32xf32> to vector<1x1x32x32xf32>
    %114 = vector.shape_cast %113 : vector<1x1x32x32xf32> to vector<32x32xf32>
    %cst_91 = arith.constant dense<0.000000e+00> : vector<8x32xf32>
    %115 = tpu.matmul %99, %114, %cst_91 {dimension_numbers = #tpu.dot_dimension_numbers<[1], [0], [0], [1], [0, 0, 1, 1], [], []>} : vector<8x32xf32>, vector<32x32xf32>, vector<8x32xf32> -> vector<8x32xf32>
    %116 = arith.addf %112, %115 : vector<8x32xf32>
    %117 = math.tanh %116 : vector<8x32xf32>
    %118 = vector.extract_strided_slice %82 {offsets = [1, 0, 0, 0], sizes = [1, 1, 32, 32], strides = [1, 1, 1, 1]} : vector<2x2x32x32xf32> to vector<1x1x32x32xf32>
    %119 = vector.shape_cast %118 : vector<1x1x32x32xf32> to vector<32x32xf32>
    %cst_92 = arith.constant dense<0.000000e+00> : vector<8x32xf32>
    %120 = tpu.matmul %117, %119, %cst_92 {dimension_numbers = #tpu.dot_dimension_numbers<[1], [0], [0], [1], [0, 0, 1, 1], [], []>} : vector<8x32xf32>, vector<32x32xf32>, vector<8x32xf32> -> vector<8x32xf32>
    %121 = vector.extract_strided_slice %83 {offsets = [1, 0, 0], sizes = [1, 1, 32], strides = [1, 1, 1]} : vector<2x1x32xf32> to vector<1x1x32xf32>
    %122 = vector.shape_cast %121 : vector<1x1x32xf32> to vector<1x32xf32>
    %123 = vector.broadcast %122 : vector<1x32xf32> to vector<8x32xf32>
    %124 = arith.addf %120, %123 : vector<8x32xf32>
    %125 = vector.extract_strided_slice %82 {offsets = [1, 1, 0, 0], sizes = [1, 1, 32, 32], strides = [1, 1, 1, 1]} : vector<2x2x32x32xf32> to vector<1x1x32x32xf32>
    %126 = vector.shape_cast %125 : vector<1x1x32x32xf32> to vector<32x32xf32>
    %cst_93 = arith.constant dense<0.000000e+00> : vector<8x32xf32>
    %127 = tpu.matmul %111, %126, %cst_93 {dimension_numbers = #tpu.dot_dimension_numbers<[1], [0], [0], [1], [0, 0, 1, 1], [], []>} : vector<8x32xf32>, vector<32x32xf32>, vector<8x32xf32> -> vector<8x32xf32>
    %128 = arith.addf %124, %127 : vector<8x32xf32>
    %129 = math.tanh %128 : vector<8x32xf32>
    %130 = vector.extract_strided_slice %91 {offsets = [16, 0], sizes = [8, 32], strides = [1, 1]} : vector<64x32xf32> to vector<8x32xf32>
    %131 = vector.extract_strided_slice %82 {offsets = [0, 1, 0, 0], sizes = [1, 1, 32, 32], strides = [1, 1, 1, 1]} : vector<2x2x32x32xf32> to vector<1x1x32x32xf32>
    %132 = vector.shape_cast %131 : vector<1x1x32x32xf32> to vector<32x32xf32>
    %cst_94 = arith.constant dense<0.000000e+00> : vector<8x32xf32>
    %133 = tpu.matmul %117, %132, %cst_94 {dimension_numbers = #tpu.dot_dimension_numbers<[1], [0], [0], [1], [0, 0, 1, 1], [], []>} : vector<8x32xf32>, vector<32x32xf32>, vector<8x32xf32> -> vector<8x32xf32>
    %134 = arith.addf %130, %133 : vector<8x32xf32>
    %135 = math.tanh %134 : vector<8x32xf32>
    %136 = vector.extract_strided_slice %82 {offsets = [1, 0, 0, 0], sizes = [1, 1, 32, 32], strides = [1, 1, 1, 1]} : vector<2x2x32x32xf32> to vector<1x1x32x32xf32>
    %137 = vector.shape_cast %136 : vector<1x1x32x32xf32> to vector<32x32xf32>
    %cst_95 = arith.constant dense<0.000000e+00> : vector<8x32xf32>
    %138 = tpu.matmul %135, %137, %cst_95 {dimension_numbers = #tpu.dot_dimension_numbers<[1], [0], [0], [1], [0, 0, 1, 1], [], []>} : vector<8x32xf32>, vector<32x32xf32>, vector<8x32xf32> -> vector<8x32xf32>
    %139 = vector.extract_strided_slice %83 {offsets = [1, 0, 0], sizes = [1, 1, 32], strides = [1, 1, 1]} : vector<2x1x32xf32> to vector<1x1x32xf32>
    %140 = vector.shape_cast %139 : vector<1x1x32xf32> to vector<1x32xf32>
    %141 = vector.broadcast %140 : vector<1x32xf32> to vector<8x32xf32>
    %142 = arith.addf %138, %141 : vector<8x32xf32>
    %143 = vector.extract_strided_slice %82 {offsets = [1, 1, 0, 0], sizes = [1, 1, 32, 32], strides = [1, 1, 1, 1]} : vector<2x2x32x32xf32> to vector<1x1x32x32xf32>
    %144 = vector.shape_cast %143 : vector<1x1x32x32xf32> to vector<32x32xf32>
    %cst_96 = arith.constant dense<0.000000e+00> : vector<8x32xf32>
    %145 = tpu.matmul %129, %144, %cst_96 {dimension_numbers = #tpu.dot_dimension_numbers<[1], [0], [0], [1], [0, 0, 1, 1], [], []>} : vector<8x32xf32>, vector<32x32xf32>, vector<8x32xf32> -> vector<8x32xf32>
    %146 = arith.addf %142, %145 : vector<8x32xf32>
    %147 = math.tanh %146 : vector<8x32xf32>
    %148 = vector.extract_strided_slice %91 {offsets = [24, 0], sizes = [8, 32], strides = [1, 1]} : vector<64x32xf32> to vector<8x32xf32>
    %149 = vector.extract_strided_slice %82 {offsets = [0, 1, 0, 0], sizes = [1, 1, 32, 32], strides = [1, 1, 1, 1]} : vector<2x2x32x32xf32> to vector<1x1x32x32xf32>
    %150 = vector.shape_cast %149 : vector<1x1x32x32xf32> to vector<32x32xf32>
    %cst_97 = arith.constant dense<0.000000e+00> : vector<8x32xf32>
    %151 = tpu.matmul %135, %150, %cst_97 {dimension_numbers = #tpu.dot_dimension_numbers<[1], [0], [0], [1], [0, 0, 1, 1], [], []>} : vector<8x32xf32>, vector<32x32xf32>, vector<8x32xf32> -> vector<8x32xf32>
    %152 = arith.addf %148, %151 : vector<8x32xf32>
    %153 = math.tanh %152 : vector<8x32xf32>
    %154 = vector.extract_strided_slice %82 {offsets = [1, 0, 0, 0], sizes = [1, 1, 32, 32], strides = [1, 1, 1, 1]} : vector<2x2x32x32xf32> to vector<1x1x32x32xf32>
    %155 = vector.shape_cast %154 : vector<1x1x32x32xf32> to vector<32x32xf32>
    %cst_98 = arith.constant dense<0.000000e+00> : vector<8x32xf32>
    %156 = tpu.matmul %153, %155, %cst_98 {dimension_numbers = #tpu.dot_dimension_numbers<[1], [0], [0], [1], [0, 0, 1, 1], [], []>} : vector<8x32xf32>, vector<32x32xf32>, vector<8x32xf32> -> vector<8x32xf32>
    %157 = vector.extract_strided_slice %83 {offsets = [1, 0, 0], sizes = [1, 1, 32], strides = [1, 1, 1]} : vector<2x1x32xf32> to vector<1x1x32xf32>
    %158 = vector.shape_cast %157 : vector<1x1x32xf32> to vector<1x32xf32>
    %159 = vector.broadcast %158 : vector<1x32xf32> to vector<8x32xf32>
    %160 = arith.addf %156, %159 : vector<8x32xf32>
    %161 = vector.extract_strided_slice %82 {offsets = [1, 1, 0, 0], sizes = [1, 1, 32, 32], strides = [1, 1, 1, 1]} : vector<2x2x32x32xf32> to vector<1x1x32x32xf32>
    %162 = vector.shape_cast %161 : vector<1x1x32x32xf32> to vector<32x32xf32>
    %cst_99 = arith.constant dense<0.000000e+00> : vector<8x32xf32>
    %163 = tpu.matmul %147, %162, %cst_99 {dimension_numbers = #tpu.dot_dimension_numbers<[1], [0], [0], [1], [0, 0, 1, 1], [], []>} : vector<8x32xf32>, vector<32x32xf32>, vector<8x32xf32> -> vector<8x32xf32>
    %164 = arith.addf %160, %163 : vector<8x32xf32>
    %165 = math.tanh %164 : vector<8x32xf32>
    %166 = vector.extract_strided_slice %91 {offsets = [32, 0], sizes = [8, 32], strides = [1, 1]} : vector<64x32xf32> to vector<8x32xf32>
    %167 = vector.extract_strided_slice %82 {offsets = [0, 1, 0, 0], sizes = [1, 1, 32, 32], strides = [1, 1, 1, 1]} : vector<2x2x32x32xf32> to vector<1x1x32x32xf32>
    %168 = vector.shape_cast %167 : vector<1x1x32x32xf32> to vector<32x32xf32>
    %cst_100 = arith.constant dense<0.000000e+00> : vector<8x32xf32>
    %169 = tpu.matmul %153, %168, %cst_100 {dimension_numbers = #tpu.dot_dimension_numbers<[1], [0], [0], [1], [0, 0, 1, 1], [], []>} : vector<8x32xf32>, vector<32x32xf32>, vector<8x32xf32> -> vector<8x32xf32>
    %170 = arith.addf %166, %169 : vector<8x32xf32>
    %171 = math.tanh %170 : vector<8x32xf32>
    %172 = vector.extract_strided_slice %82 {offsets = [1, 0, 0, 0], sizes = [1, 1, 32, 32], strides = [1, 1, 1, 1]} : vector<2x2x32x32xf32> to vector<1x1x32x32xf32>
    %173 = vector.shape_cast %172 : vector<1x1x32x32xf32> to vector<32x32xf32>
    %cst_101 = arith.constant dense<0.000000e+00> : vector<8x32xf32>
    %174 = tpu.matmul %171, %173, %cst_101 {dimension_numbers = #tpu.dot_dimension_numbers<[1], [0], [0], [1], [0, 0, 1, 1], [], []>} : vector<8x32xf32>, vector<32x32xf32>, vector<8x32xf32> -> vector<8x32xf32>
    %175 = vector.extract_strided_slice %83 {offsets = [1, 0, 0], sizes = [1, 1, 32], strides = [1, 1, 1]} : vector<2x1x32xf32> to vector<1x1x32xf32>
    %176 = vector.shape_cast %175 : vector<1x1x32xf32> to vector<1x32xf32>
    %177 = vector.broadcast %176 : vector<1x32xf32> to vector<8x32xf32>
    %178 = arith.addf %174, %177 : vector<8x32xf32>
    %179 = vector.extract_strided_slice %82 {offsets = [1, 1, 0, 0], sizes = [1, 1, 32, 32], strides = [1, 1, 1, 1]} : vector<2x2x32x32xf32> to vector<1x1x32x32xf32>
    %180 = vector.shape_cast %179 : vector<1x1x32x32xf32> to vector<32x32xf32>
    %cst_102 = arith.constant dense<0.000000e+00> : vector<8x32xf32>
    %181 = tpu.matmul %165, %180, %cst_102 {dimension_numbers = #tpu.dot_dimension_numbers<[1], [0], [0], [1], [0, 0, 1, 1], [], []>} : vector<8x32xf32>, vector<32x32xf32>, vector<8x32xf32> -> vector<8x32xf32>
    %182 = arith.addf %178, %181 : vector<8x32xf32>
    %183 = math.tanh %182 : vector<8x32xf32>
    %184 = vector.extract_strided_slice %91 {offsets = [40, 0], sizes = [8, 32], strides = [1, 1]} : vector<64x32xf32> to vector<8x32xf32>
    %185 = vector.extract_strided_slice %82 {offsets = [0, 1, 0, 0], sizes = [1, 1, 32, 32], strides = [1, 1, 1, 1]} : vector<2x2x32x32xf32> to vector<1x1x32x32xf32>
    %186 = vector.shape_cast %185 : vector<1x1x32x32xf32> to vector<32x32xf32>
    %cst_103 = arith.constant dense<0.000000e+00> : vector<8x32xf32>
    %187 = tpu.matmul %171, %186, %cst_103 {dimension_numbers = #tpu.dot_dimension_numbers<[1], [0], [0], [1], [0, 0, 1, 1], [], []>} : vector<8x32xf32>, vector<32x32xf32>, vector<8x32xf32> -> vector<8x32xf32>
    %188 = arith.addf %184, %187 : vector<8x32xf32>
    %189 = math.tanh %188 : vector<8x32xf32>
    %190 = vector.extract_strided_slice %82 {offsets = [1, 0, 0, 0], sizes = [1, 1, 32, 32], strides = [1, 1, 1, 1]} : vector<2x2x32x32xf32> to vector<1x1x32x32xf32>
    %191 = vector.shape_cast %190 : vector<1x1x32x32xf32> to vector<32x32xf32>
    %cst_104 = arith.constant dense<0.000000e+00> : vector<8x32xf32>
    %192 = tpu.matmul %189, %191, %cst_104 {dimension_numbers = #tpu.dot_dimension_numbers<[1], [0], [0], [1], [0, 0, 1, 1], [], []>} : vector<8x32xf32>, vector<32x32xf32>, vector<8x32xf32> -> vector<8x32xf32>
    %193 = vector.extract_strided_slice %83 {offsets = [1, 0, 0], sizes = [1, 1, 32], strides = [1, 1, 1]} : vector<2x1x32xf32> to vector<1x1x32xf32>
    %194 = vector.shape_cast %193 : vector<1x1x32xf32> to vector<1x32xf32>
    %195 = vector.broadcast %194 : vector<1x32xf32> to vector<8x32xf32>
    %196 = arith.addf %192, %195 : vector<8x32xf32>
    %197 = vector.extract_strided_slice %82 {offsets = [1, 1, 0, 0], sizes = [1, 1, 32, 32], strides = [1, 1, 1, 1]} : vector<2x2x32x32xf32> to vector<1x1x32x32xf32>
    %198 = vector.shape_cast %197 : vector<1x1x32x32xf32> to vector<32x32xf32>
    %cst_105 = arith.constant dense<0.000000e+00> : vector<8x32xf32>
    %199 = tpu.matmul %183, %198, %cst_105 {dimension_numbers = #tpu.dot_dimension_numbers<[1], [0], [0], [1], [0, 0, 1, 1], [], []>} : vector<8x32xf32>, vector<32x32xf32>, vector<8x32xf32> -> vector<8x32xf32>
    %200 = arith.addf %196, %199 : vector<8x32xf32>
    %201 = math.tanh %200 : vector<8x32xf32>
    %202 = vector.extract_strided_slice %91 {offsets = [48, 0], sizes = [8, 32], strides = [1, 1]} : vector<64x32xf32> to vector<8x32xf32>
    %203 = vector.extract_strided_slice %82 {offsets = [0, 1, 0, 0], sizes = [1, 1, 32, 32], strides = [1, 1, 1, 1]} : vector<2x2x32x32xf32> to vector<1x1x32x32xf32>
    %204 = vector.shape_cast %203 : vector<1x1x32x32xf32> to vector<32x32xf32>
    %cst_106 = arith.constant dense<0.000000e+00> : vector<8x32xf32>
    %205 = tpu.matmul %189, %204, %cst_106 {dimension_numbers = #tpu.dot_dimension_numbers<[1], [0], [0], [1], [0, 0, 1, 1], [], []>} : vector<8x32xf32>, vector<32x32xf32>, vector<8x32xf32> -> vector<8x32xf32>
    %206 = arith.addf %202, %205 : vector<8x32xf32>
    %207 = math.tanh %206 : vector<8x32xf32>
    %208 = vector.extract_strided_slice %82 {offsets = [1, 0, 0, 0], sizes = [1, 1, 32, 32], strides = [1, 1, 1, 1]} : vector<2x2x32x32xf32> to vector<1x1x32x32xf32>
    %209 = vector.shape_cast %208 : vector<1x1x32x32xf32> to vector<32x32xf32>
    %cst_107 = arith.constant dense<0.000000e+00> : vector<8x32xf32>
    %210 = tpu.matmul %207, %209, %cst_107 {dimension_numbers = #tpu.dot_dimension_numbers<[1], [0], [0], [1], [0, 0, 1, 1], [], []>} : vector<8x32xf32>, vector<32x32xf32>, vector<8x32xf32> -> vector<8x32xf32>
    %211 = vector.extract_strided_slice %83 {offsets = [1, 0, 0], sizes = [1, 1, 32], strides = [1, 1, 1]} : vector<2x1x32xf32> to vector<1x1x32xf32>
    %212 = vector.shape_cast %211 : vector<1x1x32xf32> to vector<1x32xf32>
    %213 = vector.broadcast %212 : vector<1x32xf32> to vector<8x32xf32>
    %214 = arith.addf %210, %213 : vector<8x32xf32>
    %215 = vector.extract_strided_slice %82 {offsets = [1, 1, 0, 0], sizes = [1, 1, 32, 32], strides = [1, 1, 1, 1]} : vector<2x2x32x32xf32> to vector<1x1x32x32xf32>
    %216 = vector.shape_cast %215 : vector<1x1x32x32xf32> to vector<32x32xf32>
    %cst_108 = arith.constant dense<0.000000e+00> : vector<8x32xf32>
    %217 = tpu.matmul %201, %216, %cst_108 {dimension_numbers = #tpu.dot_dimension_numbers<[1], [0], [0], [1], [0, 0, 1, 1], [], []>} : vector<8x32xf32>, vector<32x32xf32>, vector<8x32xf32> -> vector<8x32xf32>
    %218 = arith.addf %214, %217 : vector<8x32xf32>
    %219 = math.tanh %218 : vector<8x32xf32>
    %220 = vector.extract_strided_slice %91 {offsets = [56, 0], sizes = [8, 32], strides = [1, 1]} : vector<64x32xf32> to vector<8x32xf32>
    %221 = vector.extract_strided_slice %82 {offsets = [0, 1, 0, 0], sizes = [1, 1, 32, 32], strides = [1, 1, 1, 1]} : vector<2x2x32x32xf32> to vector<1x1x32x32xf32>
    %222 = vector.shape_cast %221 : vector<1x1x32x32xf32> to vector<32x32xf32>
    %cst_109 = arith.constant dense<0.000000e+00> : vector<8x32xf32>
    %223 = tpu.matmul %207, %222, %cst_109 {dimension_numbers = #tpu.dot_dimension_numbers<[1], [0], [0], [1], [0, 0, 1, 1], [], []>} : vector<8x32xf32>, vector<32x32xf32>, vector<8x32xf32> -> vector<8x32xf32>
    %224 = arith.addf %220, %223 : vector<8x32xf32>
    %225 = math.tanh %224 : vector<8x32xf32>
    %226 = vector.extract_strided_slice %82 {offsets = [1, 0, 0, 0], sizes = [1, 1, 32, 32], strides = [1, 1, 1, 1]} : vector<2x2x32x32xf32> to vector<1x1x32x32xf32>
    %227 = vector.shape_cast %226 : vector<1x1x32x32xf32> to vector<32x32xf32>
    %cst_110 = arith.constant dense<0.000000e+00> : vector<8x32xf32>
    %228 = tpu.matmul %225, %227, %cst_110 {dimension_numbers = #tpu.dot_dimension_numbers<[1], [0], [0], [1], [0, 0, 1, 1], [], []>} : vector<8x32xf32>, vector<32x32xf32>, vector<8x32xf32> -> vector<8x32xf32>
    %229 = vector.extract_strided_slice %83 {offsets = [1, 0, 0], sizes = [1, 1, 32], strides = [1, 1, 1]} : vector<2x1x32xf32> to vector<1x1x32xf32>
    %230 = vector.shape_cast %229 : vector<1x1x32xf32> to vector<1x32xf32>
    %231 = vector.broadcast %230 : vector<1x32xf32> to vector<8x32xf32>
    %232 = arith.addf %228, %231 : vector<8x32xf32>
    %233 = vector.extract_strided_slice %82 {offsets = [1, 1, 0, 0], sizes = [1, 1, 32, 32], strides = [1, 1, 1, 1]} : vector<2x2x32x32xf32> to vector<1x1x32x32xf32>
    %234 = vector.shape_cast %233 : vector<1x1x32x32xf32> to vector<32x32xf32>
    %cst_111 = arith.constant dense<0.000000e+00> : vector<8x32xf32>
    %235 = tpu.matmul %219, %234, %cst_111 {dimension_numbers = #tpu.dot_dimension_numbers<[1], [0], [0], [1], [0, 0, 1, 1], [], []>} : vector<8x32xf32>, vector<32x32xf32>, vector<8x32xf32> -> vector<8x32xf32>
    %236 = arith.addf %232, %235 : vector<8x32xf32>
    %237 = math.tanh %236 : vector<8x32xf32>
    %c0_112 = arith.constant 0 : index
    %c0_113 = arith.constant 0 : index
    %238 = vector.load %arg4[%c0_112, %c0_113] : memref<32x2xf32, #tpu.memory_space<vmem>>, vector<32x2xf32>
    %cst_114 = arith.constant dense<0.000000e+00> : vector<8x2xf32>
    %239 = tpu.matmul %237, %238, %cst_114 {dimension_numbers = #tpu.dot_dimension_numbers<[1], [0], [0], [1], [0, 0, 1, 1], [], []>} : vector<8x32xf32>, vector<32x2xf32>, vector<8x2xf32> -> vector<8x2xf32>
    %c0_115 = arith.constant 0 : index
    %c0_116 = arith.constant 0 : index
    %240 = vector.load %arg5[%c0_115, %c0_116] : memref<1x2xf32, #tpu.memory_space<vmem>>, vector<1x2xf32>
    %241 = vector.broadcast %240 : vector<1x2xf32> to vector<8x2xf32>
    %242 = arith.addf %239, %241 : vector<8x2xf32>
    %243 = vector.extract_strided_slice %242 {offsets = [0, 0], sizes = [2, 2], strides = [1, 1]} : vector<8x2xf32> to vector<2x2xf32>
    %244 = arith.negf %243 : vector<2x2xf32>
    %245 = math.exp %244 : vector<2x2xf32>
    %cst_117 = arith.constant 1.000000e+00 : f32
    %246 = vector.broadcast %cst_117 : f32 to vector<2x2xf32>
    %247 = arith.addf %246, %245 : vector<2x2xf32>
    %248 = arith.divf %246, %247 : vector<2x2xf32>
    %c0_118 = arith.constant 0 : index
    %c0_119 = arith.constant 0 : index
    %249 = vector.load %arg6[%c0_118, %c0_119] : memref<2x2xf32, #tpu.memory_space<vmem>>, vector<2x2xf32>
    tpu.vector_store %arg6[%c0_118, %c0_119], %248 {strides = array<i32>} : memref<2x2xf32, #tpu.memory_space<vmem>>, vector<2x2xf32>,
    return
  }
}

</mosaic_0001>

<bundles_post_ra>
// kernel: basic_rnn_forward.1
= control target key start
LH: loop header
LB: loop body
LE: loop exit
PB: predicated region body
PF: predicated region fallthrough
CT: control target
= control target key end

     0   :  { %11 = vsyncpa [#allocation5], 0  ;;  %s3266_s0 = inlined_call_operand.vmem [shape: s32[2,8], index: 0, kind: input, shape index: {}]   ;;  %s3267_s1 = inlined_call_operand.vmem [shape: f32[100,1,32], index: 1, kind: input, shape index: {}]   ;;  %s3268_s2 = inlined_call_operand.vmem [shape: f32[2,2,32,32], index: 2, kind: input, shape index: {}]   ;;  %s3269_s3 = inlined_call_operand.vmem [shape: f32[2,1,32], index: 3, kind: input, shape index: {}]   ;;  %s3270_s4 = inlined_call_operand.vmem [shape: f32[32,2], index: 4, kind: input, shape index: {}]   ;;  %s3271_s5 = inlined_call_operand.vmem [shape: f32[1,2], index: 5, kind: input, shape index: {}]   ;;  %s3272_s6 = inlined_call_operand.hbm [shape: f32[2,2], index: 6, kind: output, shape index: {}]  }
   0x1   :  { %12 = vsyncpa [#allocation4], 0  ;;  %s19_s23 = sshll.u32 %s3266_s0, 4  ;;  %s20_s23 = int_to_ptr.vmem [resolvable:$true] %s19_s23 }
   0x2   :  { %s2683_s24 = scalar_lea.vmem %s20_s23, 32  ;;  %p2688_p1 = scmp.lt.s32.totalorder %s20_s23, %s20_s23 }
   0x3   :  { %p2684_p0 = scmp.ne.s32.totalorder %s20_s23, %s2683_s24  ;;  %p2689_p2 = scmp.lt.s32.totalorder %s2683_s24, %s2683_s24 }
   0x5   :  { %p2690_p3 = por %p2689_p2, %p2688_p1 }
   0x7   :  { %p2691_p4 = pnand %p2690_p3, %p2684_p0 }
   0x9   :  { %2694 = shalt.err (!%p2691_p4)
}
   0xa   :  { %s2719_s25 = smov [#allocation3]  }
   0xb   :  { %22 = dma.vmem_to_smem %s20_s23, 32, %s2719_s25, [#allocation5]  }
   0xc   :  { %2715 = dma.done.wait [#allocation5], 32  }
   0xd   :  { %2716 = vsyncadd [#allocation5], 4294967264 }
   0xe   :  { %36 = sfence }
   0xf   :  { %v114_v0 = vld [vmem:[%s3268_s2 + $0x18] sm:$0xff]  ;;  %v113_v1 = vld [vmem:[%s3268_s2 + $0x10] sm:$0xff]  ;;  %vm37_vm0 = vcmask 261120   ;;  %v2720_v3 = vmov 0.0   ;;  %s2780_s9 = sld [smem:[#allocation3]]  ;;  %v112_v5 = vld [vmem:[%s3268_s2 + $0x8] sm:$0xff] }
  0x10   :  { %v2770_v2 = vld [vmem:[%s3268_s2 + $0x38] sm:$0xff]  ;;  %2348 = vmatprep.subr.mxu0 %v114_v0  ;;  %2368 = vmatprep.subr.mxu1 %v2720_v3  ;;  %v2776_v4 = vld [vmem:[%s3268_s2 + $0x30] sm:$0xff]  ;;  %38 = vst.msk [vmem:[#allocation2] sm:$0xff] %vm37_vm0, %v2720_v3  ;;  %39 = vst.msk [vmem:[#allocation2 + $0x8] sm:$0xff] %vm37_vm0, %v2720_v3  ;;  %s2161_s12 = sld [smem:[#allocation3 + $0x80]]  ;;  %vm49_vm1 = vcmask 253952  }
  0x11   :  { %40 = vst.msk [vmem:[#allocation2 + $0x10] sm:$0xff] %vm37_vm0, %v2720_v3  ;;  %41 = vst.msk [vmem:[#allocation2 + $0x18] sm:$0xff] %vm37_vm0, %v2720_v3  ;;  %2349 = vmatpush3.msra.mxu0 %v114_v0  ;;  %2369 = vmatpush3.msra.mxu1 %v2770_v2  ;;  %v2804_v6 = vld [vmem:[%s3268_s2 + $0x28] sm:$0xff]  ;;  %s2162_s15 = sld [smem:[#allocation3 + $0x1]]  ;;  %v111_v7 = vld [vmem:[%s3268_s2] sm:$0xff]  ;;  %vm2721_vm2 = vmmov 0  }
  0x12   :  { %42 = vst.msk [vmem:[#allocation2 + $0x20] sm:$0xff] %vm37_vm0, %v2720_v3  ;;  %43 = vst.msk [vmem:[#allocation2 + $0x28] sm:$0xff] %vm37_vm0, %v2720_v3  ;;  %2350 = vmatprep.subr.mxu0 %v113_v1  ;;  %2370 = vmatprep.subr.mxu1 %v2720_v3  ;;  %s2163_s18 = sld [smem:[#allocation3 + $0x81]]  ;;  %v2814_v8 = vld [vmem:[%s3268_s2 + $0x20] sm:$0xff]  ;;  %v2882_v21 = vld [vmem:[%s3268_s2 + $0x58] sm:$0xff]  ;;  %vm2128_vm3 = vcmask 9216  }
  0x13   :  { %44 = vst.msk [vmem:[#allocation2 + $0x30] sm:$0xff] %vm37_vm0, %v2720_v3  ;;  %45 = vst.msk [vmem:[#allocation2 + $0x38] sm:$0xff] %vm37_vm0, %v2720_v3  ;;  %2351 = vmatpush3.msra.mxu0 %v113_v1  ;;  %2371 = vmatpush3.msra.mxu1 %v2776_v4  ;;  %s2164_s8 = sld [smem:[#allocation3 + $0x2]]  ;;  %v2891_v23 = vld [vmem:[%s3268_s2 + $0x50] sm:$0xff]  ;;  %v2898_v25 = vld [vmem:[%s3268_s2 + $0x78] sm:$0xff] }
  0x14   :  { %2352 = vmatprep.subr.mxu0 %v112_v5  ;;  %2372 = vmatprep.subr.mxu1 %v2720_v3  ;;  %s2166_s10 = sld [smem:[#allocation3 + $0x3]]  ;;  %v2910_v26 = vld [vmem:[%s3268_s2 + $0x48] sm:$0xff]  ;;  %v2919_v28 = vld [vmem:[%s3268_s2 + $0x70] sm:$0xff]  ;;  %v2938_v32 = vld [vmem:[%s3268_s2 + $0x40] sm:$0xff] }
  0x15   :  { %2353 = vmatpush3.msra.mxu0 %v112_v5  ;;  %2373 = vmatpush3.msra.mxu1 %v2804_v6  ;;  %s47_s23 = scalar_lea.vmem %s3267_s1, %s2780_s9  ;;  %s2165_s9 = sld [smem:[#allocation3 + $0x82]]  ;;  %v2946_v35 = vld [vmem:[%s3268_s2 + $0x68] sm:$0xff]  ;;  %v2963_v40 = vld [vmem:[%s3268_s2 + $0x60] sm:$0xff] }
  0x16   :  { %2354 = vmatprep.subr.mxu0 %v111_v7  ;;  %2374 = vmatprep.subr.mxu1 %v2720_v3  ;;  %v48_v9 = vld [vmem:[%s47_s23] sm:$0x1]  ;;  %s52_s26 = scalar_lea.vmem %s3267_s1, %s2161_s12  ;;  %s2167_s11 = sld [smem:[#allocation3 + $0x83]]  ;;  %v3021_v57 = vld [vmem:[%s3269_s3 + $0x1] ss:$0 sm:$0xff] }
  0x17   :  { %2355 = vmatpush3.msra.mxu0 %v111_v7  ;;  %2375 = vmatpush3.msra.mxu1 %v2814_v8  ;;  %50 = vst.msk [vmem:[#allocation2] sm:$0x1] %vm49_vm1, %v48_v9  ;;  %v53_v10 = vld [vmem:[%s52_s26] sm:$0x1]  ;;  %s56_s29 = scalar_lea.vmem %s3267_s1, %s2162_s15  ;;  %s2168_s12 = sld [smem:[#allocation3 + $0x4]] }
  0x18   :  { %2376 = vmatprep.mubr.msk.f32.mxu1 %vm2721_vm2, %v2720_v3  ;;  %2379 = vmatprep.subr.mxu1 %v2720_v3  ;;  %54 = vst.msk [vmem:[#allocation2 + $0x1] sm:$0x1] %vm49_vm1, %v53_v10  ;;  %v57_v11 = vld [vmem:[%s56_s29] sm:$0x1]  ;;  %s60_s7 = scalar_lea.vmem %s3267_s1, %s2163_s18  ;;  %s2169_s13 = sld [smem:[#allocation3 + $0x84]] }
  0x19   :  { %2377 = vmatmul.mubr.f32.vlgmr.msra.gmra.mxu1 %v2720_v3  ;;  %2390 = vmatprep.subr.mxu0 %v2720_v3  ;;  %58 = vst.msk [vmem:[#allocation2 + $0x8] sm:$0x1] %vm49_vm1, %v57_v11  ;;  %v61_v12 = vld [vmem:[%s60_s7] sm:$0x1]  ;;  %s64_s16 = scalar_lea.vmem %s3267_s1, %s2164_s8  ;;  %s2170_s17 = sld [smem:[#allocation3 + $0x5]] }
  0x1a   :  { %2387 = vmatprep.mubr.msk.f32.mxu1 %vm2721_vm2, %v2720_v3  ;;  %62 = vst.msk [vmem:[#allocation2 + $0x9] sm:$0x1] %vm49_vm1, %v61_v12  ;;  %v65_v15 = vld [vmem:[%s64_s16] sm:$0x1]  ;;  %s2171_s21 = sld [smem:[#allocation3 + $0x85]]  ;;  %s72_s24 = scalar_lea.vmem %s3267_s1, %s2166_s10  ;;  %2380 = vmatpush3.msra.mxu1 %v2882_v21 }
  0x1b   :  { %s68_s20 = scalar_lea.vmem %s3267_s1, %s2165_s9  ;;  %66 = vst.msk [vmem:[#allocation2 + $0x10] sm:$0x1] %vm49_vm1, %v65_v15  ;;  %s2855_s25 = sld [smem:[#allocation3 + $0x6]]  ;;  %v73_v17 = vld [vmem:[%s72_s24] sm:$0x1]  ;;  %2381 = vmatprep.subr.mxu1 %v2720_v3 }
  0x1c   :  { %v69_v16 = vld [vmem:[%s68_s20] sm:$0x1]  ;;  %s76_s28 = scalar_lea.vmem %s3267_s1, %s2167_s11  ;;  %s2861_s29 = sld [smem:[#allocation3 + $0x86]]  ;;  %74 = vst.msk [vmem:[#allocation2 + $0x18] sm:$0x1] %vm49_vm1, %v73_v17  ;;  %2382 = vmatpush3.msra.mxu1 %v2891_v23 }
  0x1d   :  { %70 = vst.msk [vmem:[#allocation2 + $0x11] sm:$0x1] %vm49_vm1, %v69_v16  ;;  %v77_v18 = vld [vmem:[%s76_s28] sm:$0x1]  ;;  %s80_s7 = scalar_lea.vmem %s3267_s1, %s2168_s12  ;;  %s2867_s8 = sld [smem:[#allocation3 + $0x7]]  ;;  %2383 = vmatprep.subr.mxu1 %v2720_v3 }
  0x1e   :  { %78 = vst.msk [vmem:[#allocation2 + $0x19] sm:$0x1] %vm49_vm1, %v77_v18  ;;  %v81_v19 = vld [vmem:[%s80_s7] sm:$0x1]  ;;  %s84_s14 = scalar_lea.vmem %s3267_s1, %s2169_s13  ;;  %s2873_s11 = sld [smem:[#allocation3 + $0x87]]  ;;  %2384 = vmatpush3.msra.mxu1 %v2910_v26 }
  0x1f   :  { %v129_v13 = vld [vmem:[#allocation2] sm:$0xff]  ;;  %82 = vst.msk [vmem:[#allocation2 + $0x20] sm:$0x1] %vm49_vm1, %v81_v19  ;;  %s88_s18 = scalar_lea.vmem %s3267_s1, %s2170_s17  ;;  %2385 = vmatprep.subr.mxu1 %v2720_v3 }
  0x20   :  { %2356 = vmatprep.mubr.msk.f32.mxu0 %vm37_vm0, %v129_v13  ;;  %v85_v20 = vld [vmem:[%s84_s14] sm:$0x1]  ;;  %s92_s22 = scalar_lea.vmem %s3267_s1, %s2171_s21  ;;  %2386 = vmatpush3.msra.mxu1 %v2938_v32 }
  0x21   :  { %v130_v14 = vld [vmem:[#allocation2 + $0x8] sm:$0xff]  ;;  %86 = vst.msk [vmem:[#allocation2 + $0x21] sm:$0x1] %vm49_vm1, %v85_v20  ;;  %v89_v22 = vld [vmem:[%s88_s18] sm:$0x1]  ;;  %s96_s21 = scalar_lea.vmem %s3267_s1, %s2855_s25  ;;  %2401 = vmatprep.subr.mxu1 %v2720_v3 }
  0x22   :  { %2357 = vmatmul.mubr.msk.f32.vlgmr.msra.gmra.mxu0 %vm37_vm0, %v130_v14  ;;  %90 = vst.msk [vmem:[#allocation2 + $0x28] sm:$0x1] %vm49_vm1, %v89_v22  ;;  %v93_v24 = vld [vmem:[%s92_s22] sm:$0x1]  ;;  %s100_s10 = scalar_lea.vmem %s3267_s1, %s2861_s29 }
  0x23   :  { %94 = vst.msk [vmem:[#allocation2 + $0x29] sm:$0x1] %vm49_vm1, %v93_v24  ;;  %2391 = vmatpush3.msra.mxu0 %v2898_v25  ;;  %v97_v27 = vld [vmem:[%s96_s21] sm:$0x1]  ;;  %s104_s18 = scalar_lea.vmem %s3267_s1, %s2867_s8 }
  0x24   :  { %v131_v29 = vld [vmem:[#allocation2 + $0x10] sm:$0xff]  ;;  %2392 = vmatprep.subr.mxu0 %v2720_v3  ;;  %98 = vst.msk [vmem:[#allocation2 + $0x30] sm:$0x1] %vm49_vm1, %v97_v27  ;;  %v101_v30 = vld [vmem:[%s100_s10] sm:$0x1]  ;;  %s108_s19 = scalar_lea.vmem %s3267_s1, %s2873_s11 }
  0x25   :  { %2359 = vmatprep.mubr.msk.f32.mxu0 %vm37_vm0, %v131_v29  ;;  %102 = vst.msk [vmem:[#allocation2 + $0x31] sm:$0x1] %vm49_vm1, %v101_v30  ;;  %v105_v31 = vld [vmem:[%s104_s18] sm:$0x1]  ;;  %v132_v33 = vld [vmem:[#allocation2 + $0x18] sm:$0xff]  ;;  %2393 = vmatpush3.msra.mxu0 %v2919_v28 }
  0x26   :  { %106 = vst.msk [vmem:[#allocation2 + $0x38] sm:$0x1] %vm49_vm1, %v105_v31  ;;  %v109_v34 = vld [vmem:[%s108_s19] sm:$0x1]  ;;  %2360 = vmatmul.mubr.msk.f32.gmra.mxu0 %vm37_vm0, %v132_v33  ;;  %2394 = vmatprep.subr.mxu0 %v2720_v3 }
  0x27   :  { %110 = vst.msk [vmem:[#allocation2 + $0x39] sm:$0x1] %vm49_vm1, %v109_v34  ;;  %2395 = vmatpush3.msra.mxu0 %v2946_v35  ;;  %v2983_v44 = vld [vmem:[%s3269_s3] ss:$0 sm:$0xff] }
  0x28   :  { %v133_v36 = vld [vmem:[#allocation2 + $0x20] sm:$0xff]  ;;  %2396 = vmatprep.subr.mxu0 %v2720_v3 }
  0x29   :  { %2362 = vmatprep.mubr.msk.f32.mxu0 %vm37_vm0, %v133_v36  ;;  %2397 = vmatpush3.msra.mxu0 %v2963_v40 }
  0x2a   :  { %v134_v37 = vld [vmem:[#allocation2 + $0x28] sm:$0xff]  ;;  %2412 = vmatprep.subr.mxu0 %v2720_v3 }
  0x2b   :  { %2363 = vmatmul.mubr.msk.f32.gmra.mxu0 %vm37_vm0, %v134_v37 }
  0x2c   :  { %v135_v38 = vld [vmem:[#allocation2 + $0x30] sm:$0xff] }
  0x2d   :  { %2365 = vmatprep.mubr.msk.f32.mxu0 %vm37_vm0, %v135_v38 }
  0x2e   :  { %v136_v39 = vld [vmem:[#allocation2 + $0x38] sm:$0xff] }
  0x2f   :  { %2366 = vmatmul.mubr.msk.f32.gmra.mxu0 %vm37_vm0, %v136_v39 }
  0x30   :  { %2398 = vmatprep.mubr.msk.f32.mxu0 %vm2721_vm2, %v2720_v3 }
  0x33   :  { %2399 = vmatmul.mubr.f32.vlgmr.msra.gmra.mxu0 %v2720_v3 }
  0x34   :  { %2413 = vmatpush3.msra.mxu0 %v2882_v21  ;;  %2420 = vmatprep.mubr.msk.f32.mxu0 %vm2721_vm2, %v2720_v3 }
  0x35   :  { %2414 = vmatprep.subr.mxu0 %v2720_v3 }
  0x36   :  { %2415 = vmatpush3.msra.mxu0 %v2891_v23 }
  0x37   :  { %2416 = vmatprep.subr.mxu0 %v2720_v3 }
  0x38   :  { %2417 = vmatpush3.msra.mxu0 %v2910_v26 }
  0x39   :  { %2418 = vmatprep.subr.mxu0 %v2720_v3 }
  0x3a   :  { %2419 = vmatpush3.msra.mxu0 %v2938_v32 }
  0x3b   :  { %2434 = vmatprep.subr.mxu0 %v2720_v3 }
  0xd9   :  { %v341_v41 = vpop.f32.mrf.mxu1 }
  0xdb   :  { %v2378_v42 = vpop.f32.mrf.mxu1 }
  0xe2   :  { %v2358_v43 = vpop.f32.mrf.mxu0 }
  0xe3   :  { %v239_v62 = vadd.f32 %v2358_v43, %v2983_v44 }
  0xe4   :  { %v233_v45 = vpop.f32.mrf.mxu0 }
  0xe5   :  { %v234_v46 = vadd.f32 %v2983_v44, %v233_v45 }
  0xe6   :  { %v3008_v49 = vpop.f32.mrf.mxu0 }
  0xe7   :  { %v345_v47 = vadd.f32 %v341_v41, %v234_v46  ;;  %v249_v33 = vadd.f32 %v3008_v49, %v2983_v44 }
  0xe8   :  { %v243_v50 = vpop.f32.mrf.mxu0 }
  0xe9   :  { %2647 = vtanh.f32 %v345_v47  ;;  %v244_v15 = vadd.f32 %v2983_v44, %v243_v50 }
  0xeb   :  { %v3010_v51 = vpop.f32.mrf.mxu0 }
  0xed   :  { %v3012_v52 = vpop.f32.mrf.mxu0 }
  0xef   :  { %v3014_v53 = vpop.f32.mrf.mxu0 }
  0xf1   :  { %v3016_v54 = vpop.f32.mrf.mxu0 }
  0xf3   :  { %v492_v55 = vpop.f32.mrf.mxu0 }
  0xf5   :  { %v2400_v56 = vpop.f32.mrf.mxu0 }
  0xf6   :  { %v2648_v48 = vpop.eup %2647 }
  0xf7   :  { %2388 = vmatmul.mubr.msk.f32.vlgmr.msra.gmra.mxu1 %vm37_vm0, %v2648_v48 }
  0xf8   :  { %2402 = vmatpush3.msra.mxu1 %v2770_v2  ;;  %2409 = vmatprep.mubr.msk.f32.mxu1 %vm2721_vm2, %v2720_v3 }
  0xf9   :  { %2403 = vmatprep.subr.mxu1 %v2720_v3 }
  0xfa   :  { %2404 = vmatpush3.msra.mxu1 %v2776_v4 }
  0xfb   :  { %2405 = vmatprep.subr.mxu1 %v2720_v3 }
  0xfc   :  { %2406 = vmatpush3.msra.mxu1 %v2804_v6 }
  0xfd   :  { %2407 = vmatprep.subr.mxu1 %v2720_v3 }
  0xfe   :  { %2408 = vmatpush3.msra.mxu1 %v2814_v8 }
  0xff   :  { %2410 = vmatmul.mubr.msk.f32.vlgmr.msra.gmra.mxu1 %vm37_vm0, %v2648_v48  ;;  %2423 = vmatprep.subr.mxu1 %v2720_v3  ;;  %v254_v48 = vadd.f32 %v2983_v44, %v3012_v52 }
 0x100   :  { %2424 = vmatpush3.msra.mxu1 %v2898_v25  ;;  %2431 = vmatprep.mubr.msk.f32.mxu1 %vm2721_vm2, %v2720_v3 }
 0x101   :  { %2425 = vmatprep.subr.mxu1 %v2720_v3 }
 0x102   :  { %2426 = vmatpush3.msra.mxu1 %v2919_v28 }
 0x103   :  { %2427 = vmatprep.subr.mxu1 %v2720_v3 }
 0x104   :  { %2428 = vmatpush3.msra.mxu1 %v2946_v35 }
 0x105   :  { %2429 = vmatprep.subr.mxu1 %v2720_v3 }
 0x106   :  { %2430 = vmatpush3.msra.mxu1 %v2963_v40 }
 0x107   :  { %2445 = vmatprep.subr.mxu1 %v2720_v3 }
 0x1b7   :  { %v422_v58 = vpop.f32.mrf.mxu1 }
 0x1b8   :  { %v423_v59 = vadd.f32 %v3021_v57, %v422_v58 }
 0x1b9   :  { %v2389_v60 = vpop.f32.mrf.mxu1 }
 0x1ba   :  { %v496_v61 = vadd.f32 %v492_v55, %v423_v59 }
 0x1bc   :  { %2649 = vtanh.f32 %v496_v61 }
 0x1bf   :  { %v564_v63 = vpop.f32.mrf.mxu1 }
 0x1c0   :  { %v568_v0 = vadd.f32 %v564_v63, %v239_v62 }
 0x1c1   :  { %v2411_v1 = vpop.f32.mrf.mxu1 }
 0x1c2   :  { %2651 = vtanh.f32 %v568_v0  ;;  %v259_v0 = vadd.f32 %v3010_v51, %v2983_v44 }
 0x1c9   :  { %v2650_v5 = vpop.eup %2649 }
 0x1ca   :  { %2432 = vmatmul.mubr.msk.f32.vlgmr.msra.gmra.mxu1 %vm37_vm0, %v2650_v5 }
 0x1cb   :  { %2446 = vmatpush3.msra.mxu1 %v2882_v21  ;;  %2453 = vmatprep.mubr.msk.f32.mxu1 %vm2721_vm2, %v2720_v3 }
 0x1cc   :  { %2447 = vmatprep.subr.mxu1 %v2720_v3 }
 0x1cd   :  { %2448 = vmatpush3.msra.mxu1 %v2891_v23 }
 0x1ce   :  { %2449 = vmatprep.subr.mxu1 %v2720_v3 }
 0x1cf   :  { %v2652_v7 = vpop.eup %2651  ;;  %2450 = vmatpush3.msra.mxu1 %v2910_v26 }
 0x1d0   :  { %2421 = vmatmul.mubr.msk.f32.vlgmr.msra.gmra.mxu0 %vm37_vm0, %v2652_v7  ;;  %2451 = vmatprep.subr.mxu1 %v2720_v3 }
 0x1d1   :  { %2435 = vmatpush3.msra.mxu0 %v2770_v2  ;;  %2442 = vmatprep.mubr.msk.f32.mxu0 %vm2721_vm2, %v2720_v3 }
 0x1d2   :  { %2436 = vmatprep.subr.mxu0 %v2720_v3  ;;  %2452 = vmatpush3.msra.mxu1 %v2938_v32 }
 0x1d3   :  { %2437 = vmatpush3.msra.mxu0 %v2776_v4  ;;  %2467 = vmatprep.subr.mxu1 %v2720_v3 }
 0x1d4   :  { %2438 = vmatprep.subr.mxu0 %v2720_v3 }
 0x1d5   :  { %2439 = vmatpush3.msra.mxu0 %v2804_v6 }
 0x1d6   :  { %2440 = vmatprep.subr.mxu0 %v2720_v3 }
 0x1d7   :  { %2441 = vmatpush3.msra.mxu0 %v2814_v8 }
 0x1d8   :  { %2443 = vmatmul.mubr.msk.f32.vlgmr.msra.gmra.mxu0 %vm37_vm0, %v2652_v7  ;;  %2456 = vmatprep.subr.mxu0 %v2720_v3 }
 0x1d9   :  { %2457 = vmatpush3.msra.mxu0 %v2898_v25  ;;  %2464 = vmatprep.mubr.msk.f32.mxu0 %vm2721_vm2, %v2720_v3 }
 0x1da   :  { %2458 = vmatprep.subr.mxu0 %v2720_v3 }
 0x1db   :  { %2459 = vmatpush3.msra.mxu0 %v2919_v28 }
 0x1dc   :  { %2460 = vmatprep.subr.mxu0 %v2720_v3 }
 0x1dd   :  { %2461 = vmatpush3.msra.mxu0 %v2946_v35 }
 0x1de   :  { %2462 = vmatprep.subr.mxu0 %v2720_v3 }
 0x1df   :  { %2463 = vmatpush3.msra.mxu0 %v2963_v40 }
 0x1e0   :  { %2478 = vmatprep.subr.mxu0 %v2720_v3 }
 0x28a   :  { %v712_v9 = vpop.f32.mrf.mxu1 }
 0x28c   :  { %v2433_v10 = vpop.f32.mrf.mxu1 }
 0x290   :  { %v639_v11 = vpop.f32.mrf.mxu0 }
 0x291   :  { %v640_v12 = vadd.f32 %v3021_v57, %v639_v11 }
 0x292   :  { %v2422_v13 = vpop.f32.mrf.mxu0 }
 0x293   :  { %v716_v14 = vadd.f32 %v712_v9, %v640_v12 }
 0x295   :  { %2653 = vtanh.f32 %v716_v14 }
 0x298   :  { %v784_v16 = vpop.f32.mrf.mxu0 }
 0x299   :  { %v788_v17 = vadd.f32 %v784_v16, %v244_v15  ;;  %v264_v16 = vadd.f32 %v2983_v44, %v3016_v54 }
 0x29a   :  { %v2444_v18 = vpop.f32.mrf.mxu0 }
 0x29b   :  { %2655 = vtanh.f32 %v788_v17 }
 0x2a2   :  { %v2654_v19 = vpop.eup %2653 }
 0x2a3   :  { %2465 = vmatmul.mubr.msk.f32.vlgmr.msra.gmra.mxu0 %vm37_vm0, %v2654_v19 }
 0x2a4   :  { %2479 = vmatpush3.msra.mxu0 %v2882_v21  ;;  %2486 = vmatprep.mubr.msk.f32.mxu0 %vm2721_vm2, %v2720_v3 }
 0x2a5   :  { %2480 = vmatprep.subr.mxu0 %v2720_v3 }
 0x2a6   :  { %2481 = vmatpush3.msra.mxu0 %v2891_v23 }
 0x2a7   :  { %2482 = vmatprep.subr.mxu0 %v2720_v3 }
 0x2a8   :  { %v2656_v20 = vpop.eup %2655  ;;  %2483 = vmatpush3.msra.mxu0 %v2910_v26 }
 0x2a9   :  { %2454 = vmatmul.mubr.msk.f32.vlgmr.msra.gmra.mxu1 %vm37_vm0, %v2656_v20  ;;  %2484 = vmatprep.subr.mxu0 %v2720_v3 }
 0x2aa   :  { %2468 = vmatpush3.msra.mxu1 %v2770_v2  ;;  %2475 = vmatprep.mubr.msk.f32.mxu1 %vm2721_vm2, %v2720_v3 }
 0x2ab   :  { %2469 = vmatprep.subr.mxu1 %v2720_v3  ;;  %2485 = vmatpush3.msra.mxu0 %v2938_v32 }
 0x2ac   :  { %2470 = vmatpush3.msra.mxu1 %v2776_v4  ;;  %2500 = vmatprep.subr.mxu0 %v2720_v3 }
 0x2ad   :  { %2471 = vmatprep.subr.mxu1 %v2720_v3 }
 0x2ae   :  { %2472 = vmatpush3.msra.mxu1 %v2804_v6 }
 0x2af   :  { %2473 = vmatprep.subr.mxu1 %v2720_v3 }
 0x2b0   :  { %2474 = vmatpush3.msra.mxu1 %v2814_v8 }
 0x2b1   :  { %2476 = vmatmul.mubr.msk.f32.vlgmr.msra.gmra.mxu1 %vm37_vm0, %v2656_v20  ;;  %2489 = vmatprep.subr.mxu1 %v2720_v3 }
 0x2b2   :  { %2490 = vmatpush3.msra.mxu1 %v2898_v25  ;;  %2497 = vmatprep.mubr.msk.f32.mxu1 %vm2721_vm2, %v2720_v3 }
 0x2b3   :  { %2491 = vmatprep.subr.mxu1 %v2720_v3 }
 0x2b4   :  { %2492 = vmatpush3.msra.mxu1 %v2919_v28 }
 0x2b5   :  { %2493 = vmatprep.subr.mxu1 %v2720_v3 }
 0x2b6   :  { %2494 = vmatpush3.msra.mxu1 %v2946_v35 }
 0x2b7   :  { %2495 = vmatprep.subr.mxu1 %v2720_v3 }
 0x2b8   :  { %2496 = vmatpush3.msra.mxu1 %v2963_v40 }
 0x2b9   :  { %2511 = vmatprep.subr.mxu1 %v2720_v3 }
 0x363   :  { %v932_v22 = vpop.f32.mrf.mxu0 }
 0x365   :  { %v2466_v24 = vpop.f32.mrf.mxu0 }
 0x366   :  { %v2038_v24 = vld [vmem:[%s3270_s4] sm:$0xff] }
 0x369   :  { %v859_v27 = vpop.f32.mrf.mxu1 }
 0x36a   :  { %v860_v29 = vadd.f32 %v3021_v57, %v859_v27 }
 0x36b   :  { %v2455_v30 = vpop.f32.mrf.mxu1 }
 0x36c   :  { %v936_v31 = vadd.f32 %v932_v22, %v860_v29 }
 0x36e   :  { %2657 = vtanh.f32 %v936_v31 }
 0x371   :  { %v1004_v34 = vpop.f32.mrf.mxu1 }
 0x372   :  { %v1008_v36 = vadd.f32 %v1004_v34, %v249_v33 }
 0x373   :  { %v2477_v37 = vpop.f32.mrf.mxu1 }
 0x374   :  { %2659 = vtanh.f32 %v1008_v36  ;;  %v2208_v37 = vld [vmem:[%s3271_s5] ss:$0 sm:$0xff] }
 0x37b   :  { %v2658_v38 = vpop.eup %2657 }
 0x37c   :  { %2498 = vmatmul.mubr.msk.f32.vlgmr.msra.gmra.mxu1 %vm37_vm0, %v2658_v38 }
 0x37d   :  { %2512 = vmatpush3.msra.mxu1 %v2882_v21  ;;  %2519 = vmatprep.mubr.msk.f32.mxu1 %vm2721_vm2, %v2720_v3 }
 0x37e   :  { %2513 = vmatprep.subr.mxu1 %v2720_v3 }
 0x37f   :  { %2514 = vmatpush3.msra.mxu1 %v2891_v23 }
 0x380   :  { %2515 = vmatprep.subr.mxu1 %v2720_v3 }
 0x381   :  { %v2660_v39 = vpop.eup %2659  ;;  %2516 = vmatpush3.msra.mxu1 %v2910_v26 }
 0x382   :  { %2487 = vmatmul.mubr.msk.f32.vlgmr.msra.gmra.mxu0 %vm37_vm0, %v2660_v39  ;;  %2517 = vmatprep.subr.mxu1 %v2720_v3 }
 0x383   :  { %2501 = vmatpush3.msra.mxu0 %v2770_v2  ;;  %2508 = vmatprep.mubr.msk.f32.mxu0 %vm2721_vm2, %v2720_v3 }
 0x384   :  { %2502 = vmatprep.subr.mxu0 %v2720_v3  ;;  %2518 = vmatpush3.msra.mxu1 %v2938_v32 }
 0x385   :  { %2503 = vmatpush3.msra.mxu0 %v2776_v4  ;;  %2533 = vmatprep.subr.mxu1 %v2720_v3 }
 0x386   :  { %2504 = vmatprep.subr.mxu0 %v2720_v3 }
 0x387   :  { %2505 = vmatpush3.msra.mxu0 %v2804_v6 }
 0x388   :  { %2506 = vmatprep.subr.mxu0 %v2720_v3 }
 0x389   :  { %2507 = vmatpush3.msra.mxu0 %v2814_v8 }
 0x38a   :  { %2509 = vmatmul.mubr.msk.f32.vlgmr.msra.gmra.mxu0 %vm37_vm0, %v2660_v39  ;;  %2522 = vmatprep.subr.mxu0 %v2720_v3 }
 0x38b   :  { %2523 = vmatpush3.msra.mxu0 %v2898_v25  ;;  %2530 = vmatprep.mubr.msk.f32.mxu0 %vm2721_vm2, %v2720_v3 }
 0x38c   :  { %2524 = vmatprep.subr.mxu0 %v2720_v3 }
 0x38d   :  { %2525 = vmatpush3.msra.mxu0 %v2919_v28 }
 0x38e   :  { %2526 = vmatprep.subr.mxu0 %v2720_v3 }
 0x38f   :  { %2527 = vmatpush3.msra.mxu0 %v2946_v35 }
 0x390   :  { %2528 = vmatprep.subr.mxu0 %v2720_v3 }
 0x391   :  { %2529 = vmatpush3.msra.mxu0 %v2963_v40 }
 0x392   :  { %2544 = vmatprep.subr.mxu0 %v2720_v3 }
 0x43c   :  { %v1152_v41 = vpop.f32.mrf.mxu1 }
 0x43e   :  { %v2499_v42 = vpop.f32.mrf.mxu1 }
 0x442   :  { %v1079_v43 = vpop.f32.mrf.mxu0 }
 0x443   :  { %v1080_v45 = vadd.f32 %v3021_v57, %v1079_v43 }
 0x444   :  { %v2488_v46 = vpop.f32.mrf.mxu0 }
 0x445   :  { %v1156_v47 = vadd.f32 %v1152_v41, %v1080_v45 }
 0x447   :  { %2661 = vtanh.f32 %v1156_v47 }
 0x44a   :  { %v1224_v49 = vpop.f32.mrf.mxu0 }
 0x44b   :  { %v1228_v50 = vadd.f32 %v1224_v49, %v254_v48 }
 0x44c   :  { %v2510_v55 = vpop.f32.mrf.mxu0 }
 0x44d   :  { %2663 = vtanh.f32 %v1228_v50 }
 0x454   :  { %v2662_v56 = vpop.eup %2661 }
 0x455   :  { %2531 = vmatmul.mubr.msk.f32.vlgmr.msra.gmra.mxu0 %vm37_vm0, %v2662_v56 }
 0x456   :  { %2545 = vmatpush3.msra.mxu0 %v2882_v21  ;;  %2552 = vmatprep.mubr.msk.f32.mxu0 %vm2721_vm2, %v2720_v3 }
 0x457   :  { %2546 = vmatprep.subr.mxu0 %v2720_v3 }
 0x458   :  { %2547 = vmatpush3.msra.mxu0 %v2891_v23 }
 0x459   :  { %2548 = vmatprep.subr.mxu0 %v2720_v3 }
 0x45a   :  { %v2664_v58 = vpop.eup %2663  ;;  %2549 = vmatpush3.msra.mxu0 %v2910_v26 }
 0x45b   :  { %2520 = vmatmul.mubr.msk.f32.vlgmr.msra.gmra.mxu1 %vm37_vm0, %v2664_v58  ;;  %2550 = vmatprep.subr.mxu0 %v2720_v3 }
 0x45c   :  { %2534 = vmatpush3.msra.mxu1 %v2770_v2  ;;  %2541 = vmatprep.mubr.msk.f32.mxu1 %vm2721_vm2, %v2720_v3 }
 0x45d   :  { %2535 = vmatprep.subr.mxu1 %v2720_v3  ;;  %2551 = vmatpush3.msra.mxu0 %v2938_v32 }
 0x45e   :  { %2536 = vmatpush3.msra.mxu1 %v2776_v4  ;;  %2566 = vmatprep.subr.mxu0 %v2720_v3 }
 0x45f   :  { %2537 = vmatprep.subr.mxu1 %v2720_v3 }
 0x460   :  { %2538 = vmatpush3.msra.mxu1 %v2804_v6 }
 0x461   :  { %2539 = vmatprep.subr.mxu1 %v2720_v3 }
 0x462   :  { %2540 = vmatpush3.msra.mxu1 %v2814_v8 }
 0x463   :  { %2542 = vmatmul.mubr.msk.f32.vlgmr.msra.gmra.mxu1 %vm37_vm0, %v2664_v58  ;;  %2555 = vmatprep.subr.mxu1 %v2720_v3 }
 0x464   :  { %2556 = vmatpush3.msra.mxu1 %v2898_v25  ;;  %2563 = vmatprep.mubr.msk.f32.mxu1 %vm2721_vm2, %v2720_v3 }
 0x465   :  { %2557 = vmatprep.subr.mxu1 %v2720_v3 }
 0x466   :  { %2558 = vmatpush3.msra.mxu1 %v2919_v28 }
 0x467   :  { %2559 = vmatprep.subr.mxu1 %v2720_v3 }
 0x468   :  { %2560 = vmatpush3.msra.mxu1 %v2946_v35 }
 0x469   :  { %2561 = vmatprep.subr.mxu1 %v2720_v3 }
 0x46a   :  { %2562 = vmatpush3.msra.mxu1 %v2963_v40 }
 0x46b   :  { %2577 = vmatprep.subr.mxu1 %v2720_v3 }
 0x515   :  { %v1372_v52 = vpop.f32.mrf.mxu0 }
 0x517   :  { %v2532_v59 = vpop.f32.mrf.mxu0 }
 0x51b   :  { %v1299_v60 = vpop.f32.mrf.mxu1 }
 0x51c   :  { %v1300_v61 = vadd.f32 %v3021_v57, %v1299_v60 }
 0x51d   :  { %v2521_v62 = vpop.f32.mrf.mxu1 }
 0x51e   :  { %v1376_v63 = vadd.f32 %v1372_v52, %v1300_v61 }
 0x520   :  { %2665 = vtanh.f32 %v1376_v63 }
 0x523   :  { %v1444_v1 = vpop.f32.mrf.mxu1 }
 0x524   :  { %v1448_v5 = vadd.f32 %v1444_v1, %v259_v0 }
 0x525   :  { %v2543_v7 = vpop.f32.mrf.mxu1 }
 0x526   :  { %2667 = vtanh.f32 %v1448_v5 }
 0x52d   :  { %v2666_v9 = vpop.eup %2665 }
 0x52e   :  { %2564 = vmatmul.mubr.msk.f32.vlgmr.msra.gmra.mxu1 %vm37_vm0, %v2666_v9 }
 0x52f   :  { %2578 = vmatpush3.msra.mxu1 %v2882_v21  ;;  %2585 = vmatprep.mubr.msk.f32.mxu1 %vm2721_vm2, %v2720_v3 }
 0x530   :  { %2579 = vmatprep.subr.mxu1 %v2720_v3 }
 0x531   :  { %2580 = vmatpush3.msra.mxu1 %v2891_v23 }
 0x532   :  { %2581 = vmatprep.subr.mxu1 %v2720_v3 }
 0x533   :  { %v2668_v10 = vpop.eup %2667  ;;  %2582 = vmatpush3.msra.mxu1 %v2910_v26 }
 0x534   :  { %2553 = vmatmul.mubr.msk.f32.vlgmr.msra.gmra.mxu0 %vm37_vm0, %v2668_v10  ;;  %2583 = vmatprep.subr.mxu1 %v2720_v3 }
 0x535   :  { %2567 = vmatpush3.msra.mxu0 %v2770_v2  ;;  %2574 = vmatprep.mubr.msk.f32.mxu0 %vm2721_vm2, %v2720_v3 }
 0x536   :  { %2568 = vmatprep.subr.mxu0 %v2720_v3  ;;  %2584 = vmatpush3.msra.mxu1 %v2938_v32 }
 0x537   :  { %2569 = vmatpush3.msra.mxu0 %v2776_v4  ;;  %2599 = vmatprep.subr.mxu1 %v2720_v3 }
 0x538   :  { %2570 = vmatprep.subr.mxu0 %v2720_v3 }
 0x539   :  { %2571 = vmatpush3.msra.mxu0 %v2804_v6 }
 0x53a   :  { %2572 = vmatprep.subr.mxu0 %v2720_v3 }
 0x53b   :  { %2573 = vmatpush3.msra.mxu0 %v2814_v8 }
 0x53c   :  { %2575 = vmatmul.mubr.msk.f32.vlgmr.msra.gmra.mxu0 %vm37_vm0, %v2668_v10  ;;  %2588 = vmatprep.subr.mxu0 %v2720_v3 }
 0x53d   :  { %2589 = vmatpush3.msra.mxu0 %v2898_v25  ;;  %2596 = vmatprep.mubr.msk.f32.mxu0 %vm2721_vm2, %v2720_v3 }
 0x53e   :  { %2590 = vmatprep.subr.mxu0 %v2720_v3 }
 0x53f   :  { %2591 = vmatpush3.msra.mxu0 %v2919_v28 }
 0x540   :  { %2592 = vmatprep.subr.mxu0 %v2720_v3 }
 0x541   :  { %2593 = vmatpush3.msra.mxu0 %v2946_v35 }
 0x542   :  { %2594 = vmatprep.subr.mxu0 %v2720_v3 }
 0x543   :  { %2595 = vmatpush3.msra.mxu0 %v2963_v40 }
 0x544   :  { %2610 = vmatprep.subr.mxu0 %v2720_v3 }
 0x5ee   :  { %v1592_v51 = vpop.f32.mrf.mxu1 }
 0x5f0   :  { %v2565_v11 = vpop.f32.mrf.mxu1 }
 0x5f4   :  { %v1519_v12 = vpop.f32.mrf.mxu0 }
 0x5f5   :  { %v1520_v13 = vadd.f32 %v3021_v57, %v1519_v12 }
 0x5f6   :  { %v2554_v14 = vpop.f32.mrf.mxu0 }
 0x5f7   :  { %v1596_v15 = vadd.f32 %v1592_v51, %v1520_v13 }
 0x5f9   :  { %2669 = vtanh.f32 %v1596_v15 }
 0x5fc   :  { %v1664_v17 = vpop.f32.mrf.mxu0 }
 0x5fd   :  { %v1668_v18 = vadd.f32 %v1664_v17, %v264_v16 }
 0x5fe   :  { %v2576_v19 = vpop.f32.mrf.mxu0 }
 0x5ff   :  { %2671 = vtanh.f32 %v1668_v18 }
 0x606   :  { %v2670_v20 = vpop.eup %2669 }
 0x607   :  { %2597 = vmatmul.mubr.msk.f32.vlgmr.msra.gmra.mxu0 %vm37_vm0, %v2670_v20 }
 0x608   :  { %2611 = vmatpush3.msra.mxu0 %v2882_v21  ;;  %2618 = vmatprep.mubr.msk.f32.mxu0 %vm2721_vm2, %v2720_v3 }
 0x609   :  { %2612 = vmatprep.subr.mxu0 %v2720_v3 }
 0x60a   :  { %2613 = vmatpush3.msra.mxu0 %v2891_v23 }
 0x60b   :  { %2614 = vmatprep.subr.mxu0 %v2720_v3 }
 0x60c   :  { %v2672_v22 = vpop.eup %2671  ;;  %2615 = vmatpush3.msra.mxu0 %v2910_v26 }
 0x60d   :  { %2586 = vmatmul.mubr.msk.f32.vlgmr.msra.gmra.mxu1 %vm37_vm0, %v2672_v22  ;;  %2616 = vmatprep.subr.mxu0 %v2720_v3 }
 0x60e   :  { %2600 = vmatpush3.msra.mxu1 %v2770_v2  ;;  %2607 = vmatprep.mubr.msk.f32.mxu1 %vm2721_vm2, %v2720_v3 }
 0x60f   :  { %2601 = vmatprep.subr.mxu1 %v2720_v3  ;;  %2617 = vmatpush3.msra.mxu0 %v2938_v32 }
 0x610   :  { %2602 = vmatpush3.msra.mxu1 %v2776_v4  ;;  %2632 = vmatprep.subr.mxu0 %v2720_v3 }
 0x611   :  { %2603 = vmatprep.subr.mxu1 %v2720_v3 }
 0x612   :  { %2604 = vmatpush3.msra.mxu1 %v2804_v6 }
 0x613   :  { %2605 = vmatprep.subr.mxu1 %v2720_v3 }
 0x614   :  { %2606 = vmatpush3.msra.mxu1 %v2814_v8 }
 0x615   :  { %2608 = vmatmul.mubr.msk.f32.vlgmr.msra.gmra.mxu1 %vm37_vm0, %v2672_v22  ;;  %2621 = vmatprep.subr.mxu1 %v2720_v3 }
 0x616   :  { %2622 = vmatpush3.msra.mxu1 %v2898_v25  ;;  %2629 = vmatprep.mubr.msk.f32.mxu1 %vm2721_vm2, %v2720_v3  ;;  %v269_v25 = vadd.f32 %v3014_v53, %v2983_v44  ;;  %v2040_v44 = vld [vmem:[%s3270_s4 + $0x10] sm:$0xff]  ;;  %v2039_v53 = vld [vmem:[%s3270_s4 + $0x8] sm:$0xff] }
 0x617   :  { %2623 = vmatprep.subr.mxu1 %v2720_v3 }
 0x618   :  { %2624 = vmatpush3.msra.mxu1 %v2919_v28 }
 0x619   :  { %2625 = vmatprep.subr.mxu1 %v2720_v3 }
 0x61a   :  { %2626 = vmatpush3.msra.mxu1 %v2946_v35 }
 0x61b   :  { %2627 = vmatprep.subr.mxu1 %v2720_v3 }
 0x61c   :  { %2628 = vmatpush3.msra.mxu1 %v2963_v40  ;;  %v2041_v40 = vld [vmem:[%s3270_s4 + $0x18] sm:$0xff]  ;;  %s2722_s4 = smov [#allocation6]  }
 0x61d   :  { %s2136_s14 = sshll.u32 %s2722_s4, 4  ;;  %s2137_s14 = int_to_ptr.vmem [resolvable:$true] %s2136_s14 }
 0x61e   :  { %s2695_s15 = scalar_lea.vmem %s2137_s14, 32  ;;  %p2700_p6 = scmp.lt.s32.totalorder %s2137_s14, %s2137_s14 }
 0x61f   :  { %p2696_p5 = scmp.ne.s32.totalorder %s2137_s14, %s2695_s15  ;;  %p2701_p7 = scmp.lt.s32.totalorder %s2695_s15, %s2695_s15 }
 0x621   :  { %p2702_p8 = por %p2701_p7, %p2700_p6 }
 0x623   :  { %p2703_p9 = pnand %p2702_p8, %p2696_p5 }
 0x6c7   :  { %v1812_v2 = vpop.f32.mrf.mxu0 }
 0x6c9   :  { %v2598_v4 = vpop.f32.mrf.mxu0 }
 0x6cd   :  { %v1739_v6 = vpop.f32.mrf.mxu1 }
 0x6ce   :  { %v1740_v8 = vadd.f32 %v3021_v57, %v1739_v6 }
 0x6cf   :  { %v2587_v21 = vpop.f32.mrf.mxu1 }
 0x6d0   :  { %v1816_v23 = vadd.f32 %v1812_v2, %v1740_v8 }
 0x6d2   :  { %2673 = vtanh.f32 %v1816_v23 }
 0x6d5   :  { %v1884_v26 = vpop.f32.mrf.mxu1 }
 0x6d6   :  { %v1888_v28 = vadd.f32 %v1884_v26, %v269_v25 }
 0x6d7   :  { %v2609_v32 = vpop.f32.mrf.mxu1 }
 0x6d8   :  { %2675 = vtanh.f32 %v1888_v28 }
 0x6df   :  { %v2674_v35 = vpop.eup %2673 }
 0x6e0   :  { %2630 = vmatmul.mubr.msk.f32.vlgmr.msra.gmra.mxu1 %vm37_vm0, %v2674_v35 }
 0x6e5   :  { %v2676_v54 = vpop.eup %2675 }
 0x6e6   :  { %2619 = vmatmul.mubr.msk.f32.vlgmr.msra.gmra.mxu0 %vm37_vm0, %v2676_v54 }
 0x6e7   :  { %2640 = vmatprep.mubr.msk.f32.mxu0 %vm2721_vm2, %v2720_v3  ;;  %2633 = vmatpush3.msra.mxu0 %v2041_v40 }
 0x6e8   :  { %2634 = vmatprep.subr.mxu0 %v2720_v3 }
 0x6e9   :  { %2635 = vmatpush3.msra.mxu0 %v2040_v44 }
 0x6ea   :  { %2636 = vmatprep.subr.mxu0 %v2720_v3 }
 0x6eb   :  { %2637 = vmatpush3.msra.mxu0 %v2039_v53 }
 0x6ec   :  { %2638 = vmatprep.subr.mxu0 %v2720_v3 }
 0x6ed   :  { %2639 = vmatpush3.msra.mxu0 %v2038_v24 }
 0x7a0   :  { %v2032_v27 = vpop.f32.mrf.mxu1 }
 0x7a2   :  { %v2631_v29 = vpop.f32.mrf.mxu1 }
 0x7a6   :  { %v1959_v30 = vpop.f32.mrf.mxu0 }
 0x7a7   :  { %v1960_v31 = vadd.f32 %v3021_v57, %v1959_v30 }
 0x7a8   :  { %v2620_v33 = vpop.f32.mrf.mxu0 }
 0x7a9   :  { %v2036_v34 = vadd.f32 %v2032_v27, %v1960_v31 }
 0x7ab   :  { %2677 = vtanh.f32 %v2036_v34 }
 0x7b8   :  { %v2678_v36 = vpop.eup %2677 }
 0x7b9   :  { %2641 = vmatmul.mubr.msk.f32.vlgmr.msra.gmra.mxu0 %vm37_vm0, %v2678_v36 }
 0x879   :  { %v2118_v38 = vpop.f32.mrf.mxu0 }
 0x87a   :  { %v2119_v39 = vadd.f32 %v2208_v37, %v2118_v38 }
 0x87b   :  { %v2642_v41 = vpop.f32.mrf.mxu0 }
 0x87c   :  { %v2210_v3 = vmul.f32 -1.442695, %v2119_v39 }
 0x87e   :  { %2679 = vpow2.f32 %v2210_v3 }
 0x88b   :  { %v2680_v42 = vpop.eup %2679 }
 0x88c   :  { %v2125_v43 = vadd.f32 1.0, %v2680_v42 }
 0x88e   :  { %2681 = vrcp.f32 %v2125_v43 }
 0x89b   :  { %v2682_v57 = vpop.eup %2681 }
 0x89c   :  { %2129 = vst.msk [vmem:[#allocation6] sm:$0x3] %vm2128_vm3, %v2682_v57 }
 0x89d   :  { %2706 = shalt.err (!%p2703_p9)
}
 0x89e   :  { %2139 = dma.vmem_to_hbm [thread:$0]  %s2137_s14, 32, %s3272_s6, [#allocation4]  }
 0x89f   :  { %2717 = dma.done.wait [#allocation4], 32  }
 0x8a0   :  { %2718 = vsyncadd [#allocation4], 4294967264 }
 0x8a1   :  { %2143 = vsyncpa [#allocation4], 1 }
 0x8a2   :  { %2144 = vsyncpa [#allocation5], 1 }

</bundles_post_ra>
